<compile_context>
chip_gen: v7x
topology: tpu7x:2x2x1
jax: 0.10.0
libtpu: 0.0.40
codegen_flags: <defaults>
</compile_context>

<pallas_src>
import jax
import jax.numpy as jnp
from jax.experimental import pallas as pl
from jax.experimental.pallas import tpu as pltpu

# ---------------- model hyper-parameters (small, consistent with the module) ----
KERNEL_SIZE = 5        # kernelSize (24 in original, scaled down)
PRES_SENS   = 8        # tools.getNumSensors('p')
FLOW_SENS   = 6        # tools.getNumSensors('f')
CONV_OUT    = PRES_SENS - (KERNEL_SIZE - 1)   # gruInp = out_channels of both CNNs = GRU batch
SEQ_T       = 4        # conv batch == GRU sequence length
L_PRES      = 12
L_FLOW      = 10
L_OUT_P     = L_PRES - KERNEL_SIZE + 1        # 8
L_OUT_F     = L_FLOW - KERNEL_SIZE + 1        # 6
INP_SIZE    = L_OUT_P + L_OUT_F               # GRU input_size = 14
HIDDEN      = 20       # hiddenSize
NUM_LAYERS  = 2        # numLayers
NUM_CLASSES = 2        # tools.numClasses

# ---------------- packed parameter slab layout ------------------------------------
SLAB_LANES = 128
SLAB_DTYPE = jnp.bfloat16                     # dot operands; accumulation stays f32
OUT_ROWS   = SEQ_T * CONV_OUT + NUM_LAYERS * CONV_OUT   # 16 probs rows + 8 hidden rows = 24


def _slab_layout():
    """Each param at a static, 8-sublane-aligned row offset; lanes padded to 128."""
    layout = {}
    off = 0

    def add(name, rows, cols):
        nonlocal off
        assert cols <= SLAB_LANES
        layout[name] = (off, rows, cols)
        off += ((rows + 7) // 8) * 8

    add("conv_wp", CONV_OUT, KERNEL_SIZE * PRES_SENS)
    add("conv_bp", CONV_OUT, 1)
    add("conv_wf", CONV_OUT, KERNEL_SIZE * FLOW_SENS)
    add("conv_bf", CONV_OUT, 1)
    add("wih1", INP_SIZE, 3 * HIDDEN)
    add("whh1", HIDDEN, 3 * HIDDEN)
    add("bi1", 1, 3 * HIDDEN)
    add("bhn1", 1, HIDDEN)
    add("wih2", HIDDEN, 3 * HIDDEN)
    add("whh2", HIDDEN, 3 * HIDDEN)
    add("bi2", 1, 3 * HIDDEN)
    add("bhn2", 1, HIDDEN)
    add("dec_w", HIDDEN, NUM_CLASSES)
    add("dec_b", 1, NUM_CLASSES)
    return layout, off


SLAB_LAYOUT, SLAB_ROWS = _slab_layout()


# ---------------- fused forward kernel -------------------------------------------
def _cnn_gru_fused_kernel(pres_ref, flow_ref, h0_ref, w_ref, out_ref):
    H, B = HIDDEN, CONV_OUT
    bf16, f32 = jnp.bfloat16, jnp.float32

    def par(name):
        off, rows, cols = SLAB_LAYOUT[name]
        return w_ref[off:off + rows, :cols]          # static slice of the packed slab

    # ---- Conv1d + ReLU: one matmul per sensor group for all T conv-batch elements.
    # Column matrix row index = k*C_in + c (matches the (C_out, K*C_in) weight flattening);
    # built purely from static slices + concats of the VMEM-resident inputs.
    def conv_cols(x_ref, l_out):
        per_t = []
        for t in range(SEQ_T):
            xt = x_ref[t]                                            # (C_in, L)
            per_t.append(jnp.concatenate(
                [xt[:, k:k + l_out] for k in range(KERNEL_SIZE)], axis=0))   # (K*C_in, l_out)
        return jnp.concatenate(per_t, axis=1).astype(bf16)          # (K*C_in, T*l_out)

    p_act = jnp.maximum(
        jnp.dot(par("conv_wp"), conv_cols(pres_ref, L_OUT_P),
                preferred_element_type=f32) + par("conv_bp"), 0.0)   # (B, T*L_OUT_P) f32
    f_act = jnp.maximum(
        jnp.dot(par("conv_wf"), conv_cols(flow_ref, L_OUT_F),
                preferred_element_type=f32) + par("conv_bf"), 0.0)   # (B, T*L_OUT_F) f32

    # ---- GRU weights/biases: sliced once from the slab, reused across the unrolled loop ----
    wih1, whh1, bi1, bhn1 = par("wih1"), par("whh1"), par("bi1"), par("bhn1")
    wih2, whh2, bi2, bhn2 = par("wih2"), par("whh2"), par("bi2"), par("bhn2")

    # ---- layer-1 input gates hoisted out of the recurrence (no h dependence) ----
    x_all = jnp.concatenate(
        [jnp.concatenate([p_act[:, t * L_OUT_P:(t + 1) * L_OUT_P],
                          f_act[:, t * L_OUT_F:(t + 1) * L_OUT_F]], axis=1)
         for t in range(SEQ_T)], axis=0)                             # (T*B, INP_SIZE)
    gi1_all = jnp.dot(x_all.astype(bf16), wih1,
                      preferred_element_type=f32) + bi1              # (T*B, 3H) f32

    def gru_step(gi, h, whh, b_hn):
        # One dot per step; r|z fused into a single sigmoid over the first 2H lanes.
        gh = jnp.dot(h.astype(bf16), whh, preferred_element_type=f32)   # (B, 3H) f32
        rz = jax.nn.sigmoid(gi[:, :2 * H] + gh[:, :2 * H])
        r, z = rz[:, :H], rz[:, H:]
        n = jnp.tanh(gi[:, 2 * H:] + r * (gh[:, 2 * H:] + b_hn))
        return (1.0 - z) * n + z * h

    # ---- time recurrence: fully unrolled static loop (T=4, everything in vregs) ----
    h1 = h0_ref[0]                                                   # (B, H) f32
    h2 = h0_ref[1]
    ys = []
    for t in range(SEQ_T):
        h1 = gru_step(gi1_all[t * B:(t + 1) * B, :], h1, whh1, bhn1)
        gi2 = jnp.dot(h1.astype(bf16), wih2, preferred_element_type=f32) + bi2
        h2 = gru_step(gi2, h2, whh2, bhn2)
        ys.append(h2)

    # ---- decoder + sigmoid on the dense (T*B, H) slab; single packed output store ----
    y_all = jnp.concatenate(ys, axis=0)                              # (T*B, H)
    probs = jax.nn.sigmoid(
        jnp.dot(y_all.astype(bf16), par("dec_w"),
                preferred_element_type=f32) + par("dec_b"))          # (T*B, NUM_CLASSES)
    probs_pad = jnp.concatenate(
        [probs, jnp.zeros((SEQ_T * B, H - NUM_CLASSES), f32)], axis=1)   # (T*B, H)
    out_ref[...] = jnp.concatenate([probs_pad, h1, h2], axis=0)      # (OUT_ROWS, H)


def _cost_estimate():
    conv_flops = (2 * CONV_OUT * (KERNEL_SIZE * PRES_SENS) * (SEQ_T * L_OUT_P)
                  + 2 * CONV_OUT * (KERNEL_SIZE * FLOW_SENS) * (SEQ_T * L_OUT_F))
    gru_flops = SEQ_T * (2 * CONV_OUT * (INP_SIZE + HIDDEN) * 3 * HIDDEN
                         + 2 * CONV_OUT * (HIDDEN + HIDDEN) * 3 * HIDDEN)
    dec_flops = 2 * SEQ_T * CONV_OUT * HIDDEN * NUM_CLASSES
    transcendentals = (SEQ_T * NUM_LAYERS * 3 * CONV_OUT * HIDDEN
                       + SEQ_T * CONV_OUT * NUM_CLASSES)
    bytes_accessed = (4 * (SEQ_T * PRES_SENS * L_PRES + SEQ_T * FLOW_SENS * L_FLOW
                           + NUM_LAYERS * CONV_OUT * HIDDEN
                           + OUT_ROWS * HIDDEN)
                      + 2 * SLAB_ROWS * SLAB_LANES)
    return pl.CostEstimate(flops=conv_flops + gru_flops + dec_flops,
                           transcendentals=transcendentals,
                           bytes_accessed=bytes_accessed)


def cnn_gru_forward(param_slab, pres_inp, flow_inp, h0):
    """Forward pass == exactly one grid-less pallas_call (all stages fused, 4 in / 1 out DMA)."""
    packed = pl.pallas_call(
        _cnn_gru_fused_kernel,
        out_shape=jax.ShapeDtypeStruct((OUT_ROWS, HIDDEN), jnp.float32),
        in_specs=[pl.BlockSpec(memory_space=pltpu.MemorySpace.VMEM)] * 4,
        out_specs=pl.BlockSpec(memory_space=pltpu.MemorySpace.VMEM),
        cost_estimate=_cost_estimate(),
    )(pres_inp, flow_inp, h0, param_slab)
    out = packed[:SEQ_T * CONV_OUT, :NUM_CLASSES].reshape(SEQ_T, CONV_OUT, NUM_CLASSES)
    hidden = packed[SEQ_T * CONV_OUT:, :].reshape(NUM_LAYERS, CONV_OUT, HIDDEN)
    return out, hidden


# ---------------- parameters ------------------------------------------------------
def init_params(key):
    ks = jax.random.split(key, 8)
    s = 0.1
    p = {
        "pres_w": s * jax.random.normal(ks[0], (CONV_OUT, PRES_SENS, KERNEL_SIZE), jnp.float32),
        "pres_b": s * jax.random.normal(ks[1], (CONV_OUT,), jnp.float32),
        "flow_w": s * jax.random.normal(ks[2], (CONV_OUT, FLOW_SENS, KERNEL_SIZE), jnp.float32),
        "flow_b": s * jax.random.normal(ks[3], (CONV_OUT,), jnp.float32),
        "dec_w":  s * jax.random.normal(ks[4], (HIDDEN, NUM_CLASSES), jnp.float32),
        "dec_b":  s * jax.random.normal(ks[5], (NUM_CLASSES,), jnp.float32),
        "gru": [],
    }
    for layer in range(NUM_LAYERS):
        in_size = INP_SIZE if layer == 0 else HIDDEN
        kk = jax.random.split(ks[6 + layer], 4)
        p["gru"].append({
            "wih": s * jax.random.normal(kk[0], (3, in_size, HIDDEN), jnp.float32),
            "whh": s * jax.random.normal(kk[1], (3, HIDDEN, HIDDEN), jnp.float32),
            "bih": s * jax.random.normal(kk[2], (3, 1, HIDDEN), jnp.float32),
            "bhh": s * jax.random.normal(kk[3], (3, 1, HIDDEN), jnp.float32),
        })
    return p


def prepare_params(p):
    """One-time repack of the module parameters into a single padded bf16 slab."""
    def conv_flat(w):  # (C_out, C_in, K) -> (C_out, K*C_in), column order (k, c)
        c_out, c_in, k = w.shape
        return jnp.transpose(w, (0, 2, 1)).reshape(c_out, k * c_in)

    pieces = {
        "conv_wp": conv_flat(p["pres_w"]),
        "conv_bp": p["pres_b"][:, None],
        "conv_wf": conv_flat(p["flow_w"]),
        "conv_bf": p["flow_b"][:, None],
        "dec_w": p["dec_w"],
        "dec_b": p["dec_b"][None, :],
    }
    for l, g in enumerate(p["gru"], start=1):
        wih = jnp.concatenate([g["wih"][0], g["wih"][1], g["wih"][2]], axis=1)  # (in, 3H)
        whh = jnp.concatenate([g["whh"][0], g["whh"][1], g["whh"][2]], axis=1)  # (H, 3H)
        bih = g["bih"][:, 0, :]                                                  # (3, H)
        bhh = g["bhh"][:, 0, :]
        # r/z input+hidden biases folded; n-gate hidden bias kept separate (multiplied by r).
        b_i = jnp.concatenate([bih[0] + bhh[0], bih[1] + bhh[1], bih[2]])[None, :]  # (1, 3H)
        b_hn = bhh[2][None, :]                                                       # (1, H)
        pieces[f"wih{l}"] = wih
        pieces[f"whh{l}"] = whh
        pieces[f"bi{l}"] = b_i
        pieces[f"bhn{l}"] = b_hn

    slab = jnp.zeros((SLAB_ROWS, SLAB_LANES), SLAB_DTYPE)
    for name, (off, rows, cols) in SLAB_LAYOUT.items():
        v = pieces[name].astype(SLAB_DTYPE)
        assert v.shape == (rows, cols), (name, v.shape, (rows, cols))
        slab = slab.at[off:off + rows, :cols].set(v)
    return slab


# ---------------- plain-JAX reference (numerical self-check) -----------------------
def ref_forward(params, pres_inp, flow_inp, h0):
    def conv1d_relu(x, w, b):
        c_out, c_in, k = w.shape
        l_out = x.shape[-1] - k + 1
        y = jnp.broadcast_to(b[None, :, None], (x.shape[0], c_out, l_out))
        for kk in range(k):
            y = y + jnp.einsum("oc,ncl->nol", w[:, :, kk], x[:, :, kk:kk + l_out])
        return jnp.maximum(y, 0.0)

    pres_out = conv1d_relu(pres_inp, params["pres_w"], params["pres_b"])
    flow_out = conv1d_relu(flow_inp, params["flow_w"], params["flow_b"])
    x = jnp.concatenate((pres_out, flow_out), axis=2)            # (T, B, I)

    def gru_layer(x_seq, h, g):
        wih, whh = g["wih"], g["whh"]
        bih, bhh = g["bih"][:, 0, :], g["bhh"][:, 0, :]
        outs = []
        for t in range(x_seq.shape[0]):
            xt = x_seq[t]
            r = jax.nn.sigmoid(xt @ wih[0] + bih[0] + h @ whh[0] + bhh[0])
            z = jax.nn.sigmoid(xt @ wih[1] + bih[1] + h @ whh[1] + bhh[1])
            n = jnp.tanh(xt @ wih[2] + bih[2] + r * (h @ whh[2] + bhh[2]))
            h = (1.0 - z) * n + z * h
            outs.append(h)
        return jnp.stack(outs, axis=0), h

    y, hf1 = gru_layer(x, h0[0], params["gru"][0])
    y, hf2 = gru_layer(y, h0[1], params["gru"][1])
    out = jax.nn.sigmoid(y @ params["dec_w"] + params["dec_b"])
    return out, jnp.stack([hf1, hf2], axis=0)


if __name__ == "__main__":
    key = jax.random.PRNGKey(0)
    k_p, k_in1, k_in2, k_h = jax.random.split(key, 4)

    params = init_params(k_p)
    param_slab = prepare_params(params)
    pres_inp = jax.random.normal(k_in1, (SEQ_T, PRES_SENS, L_PRES), jnp.float32)
    flow_inp = jax.random.normal(k_in2, (SEQ_T, FLOW_SENS, L_FLOW), jnp.float32)
    h0 = jax.random.normal(k_h, (NUM_LAYERS, CONV_OUT, HIDDEN), jnp.float32)

    out, hidden = jax.jit(cnn_gru_forward)(param_slab, pres_inp, flow_inp, h0)
    jax.block_until_ready((out, hidden))
    assert out.shape == (SEQ_T, CONV_OUT, NUM_CLASSES)
    assert hidden.shape == (NUM_LAYERS, CONV_OUT, HIDDEN)

    # numerical self-check against a plain-JAX f32 reference of the same module.
    # Tolerance 1e-2 is kept because the kernel deliberately uses bf16 dot operands
    # (f32 accumulation) per the perf review; the f32 path agreed to much tighter bounds.
    ref_out, ref_hidden = ref_forward(params, pres_inp, flow_inp, h0)
    assert jnp.allclose(out, ref_out, atol=1e-2, rtol=1e-2), \
        f"output mismatch, max|diff|={jnp.max(jnp.abs(out - ref_out))}"
    assert jnp.allclose(hidden, ref_hidden, atol=1e-2, rtol=1e-2), \
        f"hidden mismatch, max|diff|={jnp.max(jnp.abs(hidden - ref_hidden))}"
    print("KERNEL_OK")
</pallas_src>

<mosaic_0001>
module attributes {stable_mosaic.version = 11 : i64} {
  func.func @_cnn_gru_fused_kernel(%arg0: memref<4x8x12xf32, #tpu.memory_space<vmem>>, %arg1: memref<4x6x10xf32, #tpu.memory_space<vmem>>, %arg2: memref<2x4x20xf32, #tpu.memory_space<vmem>>, %arg3: memref<184x128xbf16, #tpu.memory_space<vmem>>, %arg4: memref<24x20xf32, #tpu.memory_space<vmem>>) attributes {dimension_semantics = [], scalar_prefetch = 0 : i64, scratch_operands = 0 : i64, tpu.core_type = #tpu.core_type<tc>} {
    %c0 = arith.constant 0 : index
    %c0_0 = arith.constant 0 : index
    %0 = vector.load %arg3[%c0, %c0_0] : memref<184x128xbf16, #tpu.memory_space<vmem>>, vector<4x40xbf16>
    %c0_1 = arith.constant 0 : index
    %c0_2 = arith.constant 0 : index
    %c0_3 = arith.constant 0 : index
    %1 = vector.load %arg0[%c0_1, %c0_2, %c0_3] : memref<4x8x12xf32, #tpu.memory_space<vmem>>, vector<1x8x12xf32>
    %2 = vector.shape_cast %1 : vector<1x8x12xf32> to vector<8x12xf32>
    %3 = vector.extract_strided_slice %2 {offsets = [0, 0], sizes = [8, 8], strides = [1, 1]} : vector<8x12xf32> to vector<8x8xf32>
    %4 = vector.extract_strided_slice %2 {offsets = [0, 1], sizes = [8, 8], strides = [1, 1]} : vector<8x12xf32> to vector<8x8xf32>
    %5 = vector.extract_strided_slice %2 {offsets = [0, 2], sizes = [8, 8], strides = [1, 1]} : vector<8x12xf32> to vector<8x8xf32>
    %6 = vector.extract_strided_slice %2 {offsets = [0, 3], sizes = [8, 8], strides = [1, 1]} : vector<8x12xf32> to vector<8x8xf32>
    %7 = vector.extract_strided_slice %2 {offsets = [0, 4], sizes = [8, 8], strides = [1, 1]} : vector<8x12xf32> to vector<8x8xf32>
    %8 = tpu.concatenate %3, %4, %5, %6, %7 in 0 : vector<8x8xf32>, vector<8x8xf32>, vector<8x8xf32>, vector<8x8xf32>, vector<8x8xf32> -> vector<40x8xf32>
    %c1 = arith.constant 1 : index
    %c0_4 = arith.constant 0 : index
    %c0_5 = arith.constant 0 : index
    %9 = vector.load %arg0[%c1, %c0_4, %c0_5] : memref<4x8x12xf32, #tpu.memory_space<vmem>>, vector<1x8x12xf32>
    %10 = vector.shape_cast %9 : vector<1x8x12xf32> to vector<8x12xf32>
    %11 = vector.extract_strided_slice %10 {offsets = [0, 0], sizes = [8, 8], strides = [1, 1]} : vector<8x12xf32> to vector<8x8xf32>
    %12 = vector.extract_strided_slice %10 {offsets = [0, 1], sizes = [8, 8], strides = [1, 1]} : vector<8x12xf32> to vector<8x8xf32>
    %13 = vector.extract_strided_slice %10 {offsets = [0, 2], sizes = [8, 8], strides = [1, 1]} : vector<8x12xf32> to vector<8x8xf32>
    %14 = vector.extract_strided_slice %10 {offsets = [0, 3], sizes = [8, 8], strides = [1, 1]} : vector<8x12xf32> to vector<8x8xf32>
    %15 = vector.extract_strided_slice %10 {offsets = [0, 4], sizes = [8, 8], strides = [1, 1]} : vector<8x12xf32> to vector<8x8xf32>
    %16 = tpu.concatenate %11, %12, %13, %14, %15 in 0 : vector<8x8xf32>, vector<8x8xf32>, vector<8x8xf32>, vector<8x8xf32>, vector<8x8xf32> -> vector<40x8xf32>
    %c2 = arith.constant 2 : index
    %c0_6 = arith.constant 0 : index
    %c0_7 = arith.constant 0 : index
    %17 = vector.load %arg0[%c2, %c0_6, %c0_7] : memref<4x8x12xf32, #tpu.memory_space<vmem>>, vector<1x8x12xf32>
    %18 = vector.shape_cast %17 : vector<1x8x12xf32> to vector<8x12xf32>
    %19 = vector.extract_strided_slice %18 {offsets = [0, 0], sizes = [8, 8], strides = [1, 1]} : vector<8x12xf32> to vector<8x8xf32>
    %20 = vector.extract_strided_slice %18 {offsets = [0, 1], sizes = [8, 8], strides = [1, 1]} : vector<8x12xf32> to vector<8x8xf32>
    %21 = vector.extract_strided_slice %18 {offsets = [0, 2], sizes = [8, 8], strides = [1, 1]} : vector<8x12xf32> to vector<8x8xf32>
    %22 = vector.extract_strided_slice %18 {offsets = [0, 3], sizes = [8, 8], strides = [1, 1]} : vector<8x12xf32> to vector<8x8xf32>
    %23 = vector.extract_strided_slice %18 {offsets = [0, 4], sizes = [8, 8], strides = [1, 1]} : vector<8x12xf32> to vector<8x8xf32>
    %24 = tpu.concatenate %19, %20, %21, %22, %23 in 0 : vector<8x8xf32>, vector<8x8xf32>, vector<8x8xf32>, vector<8x8xf32>, vector<8x8xf32> -> vector<40x8xf32>
    %c3 = arith.constant 3 : index
    %c0_8 = arith.constant 0 : index
    %c0_9 = arith.constant 0 : index
    %25 = vector.load %arg0[%c3, %c0_8, %c0_9] : memref<4x8x12xf32, #tpu.memory_space<vmem>>, vector<1x8x12xf32>
    %26 = vector.shape_cast %25 : vector<1x8x12xf32> to vector<8x12xf32>
    %27 = vector.extract_strided_slice %26 {offsets = [0, 0], sizes = [8, 8], strides = [1, 1]} : vector<8x12xf32> to vector<8x8xf32>
    %28 = vector.extract_strided_slice %26 {offsets = [0, 1], sizes = [8, 8], strides = [1, 1]} : vector<8x12xf32> to vector<8x8xf32>
    %29 = vector.extract_strided_slice %26 {offsets = [0, 2], sizes = [8, 8], strides = [1, 1]} : vector<8x12xf32> to vector<8x8xf32>
    %30 = vector.extract_strided_slice %26 {offsets = [0, 3], sizes = [8, 8], strides = [1, 1]} : vector<8x12xf32> to vector<8x8xf32>
    %31 = vector.extract_strided_slice %26 {offsets = [0, 4], sizes = [8, 8], strides = [1, 1]} : vector<8x12xf32> to vector<8x8xf32>
    %32 = tpu.concatenate %27, %28, %29, %30, %31 in 0 : vector<8x8xf32>, vector<8x8xf32>, vector<8x8xf32>, vector<8x8xf32>, vector<8x8xf32> -> vector<40x8xf32>
    %33 = tpu.concatenate %8, %16, %24, %32 in 1 : vector<40x8xf32>, vector<40x8xf32>, vector<40x8xf32>, vector<40x8xf32> -> vector<40x32xf32>
    %34 = arith.truncf %33 : vector<40x32xf32> to vector<40x32xbf16>
    %cst = arith.constant dense<0.000000e+00> : vector<4x32xf32>
    %35 = tpu.matmul %0, %34, %cst {dimension_numbers = #tpu.dot_dimension_numbers<[1], [0], [0], [1], [0, 0, 1, 1], [], []>} : vector<4x40xbf16>, vector<40x32xbf16>, vector<4x32xf32> -> vector<4x32xf32>
    %c8 = arith.constant 8 : index
    %c0_10 = arith.constant 0 : index
    %36 = vector.load %arg3[%c8, %c0_10] : memref<184x128xbf16, #tpu.memory_space<vmem>>, vector<4x1xbf16>
    %37 = arith.extf %36 : vector<4x1xbf16> to vector<4x1xf32>
    %38 = vector.broadcast %37 : vector<4x1xf32> to vector<4x32xf32>
    %39 = arith.addf %35, %38 : vector<4x32xf32>
    %cst_11 = arith.constant 0.000000e+00 : f32
    %40 = vector.broadcast %cst_11 : f32 to vector<4x32xf32>
    %41 = arith.maximumf %39, %40 : vector<4x32xf32>
    %c16 = arith.constant 16 : index
    %c0_12 = arith.constant 0 : index
    %42 = vector.load %arg3[%c16, %c0_12] : memref<184x128xbf16, #tpu.memory_space<vmem>>, vector<4x30xbf16>
    %c0_13 = arith.constant 0 : index
    %c0_14 = arith.constant 0 : index
    %c0_15 = arith.constant 0 : index
    %43 = vector.load %arg1[%c0_13, %c0_14, %c0_15] : memref<4x6x10xf32, #tpu.memory_space<vmem>>, vector<1x6x10xf32>
    %44 = vector.shape_cast %43 : vector<1x6x10xf32> to vector<6x10xf32>
    %45 = vector.extract_strided_slice %44 {offsets = [0, 0], sizes = [6, 6], strides = [1, 1]} : vector<6x10xf32> to vector<6x6xf32>
    %46 = vector.extract_strided_slice %44 {offsets = [0, 1], sizes = [6, 6], strides = [1, 1]} : vector<6x10xf32> to vector<6x6xf32>
    %47 = vector.extract_strided_slice %44 {offsets = [0, 2], sizes = [6, 6], strides = [1, 1]} : vector<6x10xf32> to vector<6x6xf32>
    %48 = vector.extract_strided_slice %44 {offsets = [0, 3], sizes = [6, 6], strides = [1, 1]} : vector<6x10xf32> to vector<6x6xf32>
    %49 = vector.extract_strided_slice %44 {offsets = [0, 4], sizes = [6, 6], strides = [1, 1]} : vector<6x10xf32> to vector<6x6xf32>
    %50 = tpu.concatenate %45, %46, %47, %48, %49 in 0 : vector<6x6xf32>, vector<6x6xf32>, vector<6x6xf32>, vector<6x6xf32>, vector<6x6xf32> -> vector<30x6xf32>
    %c1_16 = arith.constant 1 : index
    %c0_17 = arith.constant 0 : index
    %c0_18 = arith.constant 0 : index
    %51 = vector.load %arg1[%c1_16, %c0_17, %c0_18] : memref<4x6x10xf32, #tpu.memory_space<vmem>>, vector<1x6x10xf32>
    %52 = vector.shape_cast %51 : vector<1x6x10xf32> to vector<6x10xf32>
    %53 = vector.extract_strided_slice %52 {offsets = [0, 0], sizes = [6, 6], strides = [1, 1]} : vector<6x10xf32> to vector<6x6xf32>
    %54 = vector.extract_strided_slice %52 {offsets = [0, 1], sizes = [6, 6], strides = [1, 1]} : vector<6x10xf32> to vector<6x6xf32>
    %55 = vector.extract_strided_slice %52 {offsets = [0, 2], sizes = [6, 6], strides = [1, 1]} : vector<6x10xf32> to vector<6x6xf32>
    %56 = vector.extract_strided_slice %52 {offsets = [0, 3], sizes = [6, 6], strides = [1, 1]} : vector<6x10xf32> to vector<6x6xf32>
    %57 = vector.extract_strided_slice %52 {offsets = [0, 4], sizes = [6, 6], strides = [1, 1]} : vector<6x10xf32> to vector<6x6xf32>
    %58 = tpu.concatenate %53, %54, %55, %56, %57 in 0 : vector<6x6xf32>, vector<6x6xf32>, vector<6x6xf32>, vector<6x6xf32>, vector<6x6xf32> -> vector<30x6xf32>
    %c2_19 = arith.constant 2 : index
    %c0_20 = arith.constant 0 : index
    %c0_21 = arith.constant 0 : index
    %59 = vector.load %arg1[%c2_19, %c0_20, %c0_21] : memref<4x6x10xf32, #tpu.memory_space<vmem>>, vector<1x6x10xf32>
    %60 = vector.shape_cast %59 : vector<1x6x10xf32> to vector<6x10xf32>
    %61 = vector.extract_strided_slice %60 {offsets = [0, 0], sizes = [6, 6], strides = [1, 1]} : vector<6x10xf32> to vector<6x6xf32>
    %62 = vector.extract_strided_slice %60 {offsets = [0, 1], sizes = [6, 6], strides = [1, 1]} : vector<6x10xf32> to vector<6x6xf32>
    %63 = vector.extract_strided_slice %60 {offsets = [0, 2], sizes = [6, 6], strides = [1, 1]} : vector<6x10xf32> to vector<6x6xf32>
    %64 = vector.extract_strided_slice %60 {offsets = [0, 3], sizes = [6, 6], strides = [1, 1]} : vector<6x10xf32> to vector<6x6xf32>
    %65 = vector.extract_strided_slice %60 {offsets = [0, 4], sizes = [6, 6], strides = [1, 1]} : vector<6x10xf32> to vector<6x6xf32>
    %66 = tpu.concatenate %61, %62, %63, %64, %65 in 0 : vector<6x6xf32>, vector<6x6xf32>, vector<6x6xf32>, vector<6x6xf32>, vector<6x6xf32> -> vector<30x6xf32>
    %c3_22 = arith.constant 3 : index
    %c0_23 = arith.constant 0 : index
    %c0_24 = arith.constant 0 : index
    %67 = vector.load %arg1[%c3_22, %c0_23, %c0_24] : memref<4x6x10xf32, #tpu.memory_space<vmem>>, vector<1x6x10xf32>
    %68 = vector.shape_cast %67 : vector<1x6x10xf32> to vector<6x10xf32>
    %69 = vector.extract_strided_slice %68 {offsets = [0, 0], sizes = [6, 6], strides = [1, 1]} : vector<6x10xf32> to vector<6x6xf32>
    %70 = vector.extract_strided_slice %68 {offsets = [0, 1], sizes = [6, 6], strides = [1, 1]} : vector<6x10xf32> to vector<6x6xf32>
    %71 = vector.extract_strided_slice %68 {offsets = [0, 2], sizes = [6, 6], strides = [1, 1]} : vector<6x10xf32> to vector<6x6xf32>
    %72 = vector.extract_strided_slice %68 {offsets = [0, 3], sizes = [6, 6], strides = [1, 1]} : vector<6x10xf32> to vector<6x6xf32>
    %73 = vector.extract_strided_slice %68 {offsets = [0, 4], sizes = [6, 6], strides = [1, 1]} : vector<6x10xf32> to vector<6x6xf32>
    %74 = tpu.concatenate %69, %70, %71, %72, %73 in 0 : vector<6x6xf32>, vector<6x6xf32>, vector<6x6xf32>, vector<6x6xf32>, vector<6x6xf32> -> vector<30x6xf32>
    %75 = tpu.concatenate %50, %58, %66, %74 in 1 : vector<30x6xf32>, vector<30x6xf32>, vector<30x6xf32>, vector<30x6xf32> -> vector<30x24xf32>
    %76 = arith.truncf %75 : vector<30x24xf32> to vector<30x24xbf16>
    %cst_25 = arith.constant dense<0.000000e+00> : vector<4x24xf32>
    %77 = tpu.matmul %42, %76, %cst_25 {dimension_numbers = #tpu.dot_dimension_numbers<[1], [0], [0], [1], [0, 0, 1, 1], [], []>} : vector<4x30xbf16>, vector<30x24xbf16>, vector<4x24xf32> -> vector<4x24xf32>
    %c24 = arith.constant 24 : index
    %c0_26 = arith.constant 0 : index
    %78 = vector.load %arg3[%c24, %c0_26] : memref<184x128xbf16, #tpu.memory_space<vmem>>, vector<4x1xbf16>
    %79 = arith.extf %78 : vector<4x1xbf16> to vector<4x1xf32>
    %80 = vector.broadcast %79 : vector<4x1xf32> to vector<4x24xf32>
    %81 = arith.addf %77, %80 : vector<4x24xf32>
    %cst_27 = arith.constant 0.000000e+00 : f32
    %82 = vector.broadcast %cst_27 : f32 to vector<4x24xf32>
    %83 = arith.maximumf %81, %82 : vector<4x24xf32>
    %c32 = arith.constant 32 : index
    %c0_28 = arith.constant 0 : index
    %84 = vector.load %arg3[%c32, %c0_28] : memref<184x128xbf16, #tpu.memory_space<vmem>>, vector<14x60xbf16>
    %c48 = arith.constant 48 : index
    %c0_29 = arith.constant 0 : index
    %85 = vector.load %arg3[%c48, %c0_29] : memref<184x128xbf16, #tpu.memory_space<vmem>>, vector<20x60xbf16>
    %c72 = arith.constant 72 : index
    %c0_30 = arith.constant 0 : index
    %86 = vector.load %arg3[%c72, %c0_30] : memref<184x128xbf16, #tpu.memory_space<vmem>>, vector<1x60xbf16>
    %c80 = arith.constant 80 : index
    %c0_31 = arith.constant 0 : index
    %87 = vector.load %arg3[%c80, %c0_31] : memref<184x128xbf16, #tpu.memory_space<vmem>>, vector<1x20xbf16>
    %c88 = arith.constant 88 : index
    %c0_32 = arith.constant 0 : index
    %88 = vector.load %arg3[%c88, %c0_32] : memref<184x128xbf16, #tpu.memory_space<vmem>>, vector<20x60xbf16>
    %c112 = arith.constant 112 : index
    %c0_33 = arith.constant 0 : index
    %89 = vector.load %arg3[%c112, %c0_33] : memref<184x128xbf16, #tpu.memory_space<vmem>>, vector<20x60xbf16>
    %c136 = arith.constant 136 : index
    %c0_34 = arith.constant 0 : index
    %90 = vector.load %arg3[%c136, %c0_34] : memref<184x128xbf16, #tpu.memory_space<vmem>>, vector<1x60xbf16>
    %c144 = arith.constant 144 : index
    %c0_35 = arith.constant 0 : index
    %91 = vector.load %arg3[%c144, %c0_35] : memref<184x128xbf16, #tpu.memory_space<vmem>>, vector<1x20xbf16>
    %92 = vector.extract_strided_slice %41 {offsets = [0, 0], sizes = [4, 8], strides = [1, 1]} : vector<4x32xf32> to vector<4x8xf32>
    %93 = vector.extract_strided_slice %83 {offsets = [0, 0], sizes = [4, 6], strides = [1, 1]} : vector<4x24xf32> to vector<4x6xf32>
    %94 = tpu.concatenate %92, %93 in 1 : vector<4x8xf32>, vector<4x6xf32> -> vector<4x14xf32>
    %95 = vector.extract_strided_slice %41 {offsets = [0, 8], sizes = [4, 8], strides = [1, 1]} : vector<4x32xf32> to vector<4x8xf32>
    %96 = vector.extract_strided_slice %83 {offsets = [0, 6], sizes = [4, 6], strides = [1, 1]} : vector<4x24xf32> to vector<4x6xf32>
    %97 = tpu.concatenate %95, %96 in 1 : vector<4x8xf32>, vector<4x6xf32> -> vector<4x14xf32>
    %98 = vector.extract_strided_slice %41 {offsets = [0, 16], sizes = [4, 8], strides = [1, 1]} : vector<4x32xf32> to vector<4x8xf32>
    %99 = vector.extract_strided_slice %83 {offsets = [0, 12], sizes = [4, 6], strides = [1, 1]} : vector<4x24xf32> to vector<4x6xf32>
    %100 = tpu.concatenate %98, %99 in 1 : vector<4x8xf32>, vector<4x6xf32> -> vector<4x14xf32>
    %101 = vector.extract_strided_slice %41 {offsets = [0, 24], sizes = [4, 8], strides = [1, 1]} : vector<4x32xf32> to vector<4x8xf32>
    %102 = vector.extract_strided_slice %83 {offsets = [0, 18], sizes = [4, 6], strides = [1, 1]} : vector<4x24xf32> to vector<4x6xf32>
    %103 = tpu.concatenate %101, %102 in 1 : vector<4x8xf32>, vector<4x6xf32> -> vector<4x14xf32>
    %104 = tpu.concatenate %94, %97, %100, %103 in 0 : vector<4x14xf32>, vector<4x14xf32>, vector<4x14xf32>, vector<4x14xf32> -> vector<16x14xf32>
    %105 = arith.truncf %104 : vector<16x14xf32> to vector<16x14xbf16>
    %cst_36 = arith.constant dense<0.000000e+00> : vector<16x60xf32>
    %106 = tpu.matmul %105, %84, %cst_36 {dimension_numbers = #tpu.dot_dimension_numbers<[1], [0], [0], [1], [0, 0, 1, 1], [], []>} : vector<16x14xbf16>, vector<14x60xbf16>, vector<16x60xf32> -> vector<16x60xf32>
    %107 = arith.extf %86 : vector<1x60xbf16> to vector<1x60xf32>
    %108 = vector.broadcast %107 : vector<1x60xf32> to vector<16x60xf32>
    %109 = arith.addf %106, %108 : vector<16x60xf32>
    %c0_37 = arith.constant 0 : index
    %c0_38 = arith.constant 0 : index
    %c0_39 = arith.constant 0 : index
    %110 = vector.load %arg2[%c0_37, %c0_38, %c0_39] : memref<2x4x20xf32, #tpu.memory_space<vmem>>, vector<1x4x20xf32>
    %111 = vector.shape_cast %110 : vector<1x4x20xf32> to vector<4x20xf32>
    %c1_40 = arith.constant 1 : index
    %c0_41 = arith.constant 0 : index
    %c0_42 = arith.constant 0 : index
    %112 = vector.load %arg2[%c1_40, %c0_41, %c0_42] : memref<2x4x20xf32, #tpu.memory_space<vmem>>, vector<1x4x20xf32>
    %113 = vector.shape_cast %112 : vector<1x4x20xf32> to vector<4x20xf32>
    %114 = vector.extract_strided_slice %109 {offsets = [0, 0], sizes = [4, 60], strides = [1, 1]} : vector<16x60xf32> to vector<4x60xf32>
    %115 = arith.truncf %111 : vector<4x20xf32> to vector<4x20xbf16>
    %cst_43 = arith.constant dense<0.000000e+00> : vector<4x60xf32>
    %116 = tpu.matmul %115, %85, %cst_43 {dimension_numbers = #tpu.dot_dimension_numbers<[1], [0], [0], [1], [0, 0, 1, 1], [], []>} : vector<4x20xbf16>, vector<20x60xbf16>, vector<4x60xf32> -> vector<4x60xf32>
    %117 = vector.extract_strided_slice %114 {offsets = [0, 0], sizes = [4, 40], strides = [1, 1]} : vector<4x60xf32> to vector<4x40xf32>
    %118 = vector.extract_strided_slice %116 {offsets = [0, 0], sizes = [4, 40], strides = [1, 1]} : vector<4x60xf32> to vector<4x40xf32>
    %119 = arith.addf %117, %118 : vector<4x40xf32>
    %120 = arith.negf %119 : vector<4x40xf32>
    %121 = math.exp %120 : vector<4x40xf32>
    %cst_44 = arith.constant 1.000000e+00 : f32
    %122 = vector.broadcast %cst_44 : f32 to vector<4x40xf32>
    %123 = arith.addf %122, %121 : vector<4x40xf32>
    %124 = arith.divf %122, %123 : vector<4x40xf32>
    %125 = vector.extract_strided_slice %124 {offsets = [0, 0], sizes = [4, 20], strides = [1, 1]} : vector<4x40xf32> to vector<4x20xf32>
    %126 = vector.extract_strided_slice %124 {offsets = [0, 20], sizes = [4, 20], strides = [1, 1]} : vector<4x40xf32> to vector<4x20xf32>
    %127 = vector.extract_strided_slice %114 {offsets = [0, 40], sizes = [4, 20], strides = [1, 1]} : vector<4x60xf32> to vector<4x20xf32>
    %128 = vector.extract_strided_slice %116 {offsets = [0, 40], sizes = [4, 20], strides = [1, 1]} : vector<4x60xf32> to vector<4x20xf32>
    %129 = arith.extf %87 : vector<1x20xbf16> to vector<1x20xf32>
    %130 = vector.broadcast %129 : vector<1x20xf32> to vector<4x20xf32>
    %131 = arith.addf %128, %130 : vector<4x20xf32>
    %132 = arith.mulf %125, %131 : vector<4x20xf32>
    %133 = arith.addf %127, %132 : vector<4x20xf32>
    %134 = math.tanh %133 : vector<4x20xf32>
    %cst_45 = arith.constant 1.000000e+00 : f32
    %135 = vector.broadcast %cst_45 : f32 to vector<4x20xf32>
    %136 = arith.subf %135, %126 : vector<4x20xf32>
    %137 = arith.mulf %136, %134 : vector<4x20xf32>
    %138 = arith.mulf %126, %111 : vector<4x20xf32>
    %139 = arith.addf %137, %138 : vector<4x20xf32>
    %140 = arith.truncf %139 : vector<4x20xf32> to vector<4x20xbf16>
    %cst_46 = arith.constant dense<0.000000e+00> : vector<4x60xf32>
    %141 = tpu.matmul %140, %88, %cst_46 {dimension_numbers = #tpu.dot_dimension_numbers<[1], [0], [0], [1], [0, 0, 1, 1], [], []>} : vector<4x20xbf16>, vector<20x60xbf16>, vector<4x60xf32> -> vector<4x60xf32>
    %142 = arith.extf %90 : vector<1x60xbf16> to vector<1x60xf32>
    %143 = vector.broadcast %142 : vector<1x60xf32> to vector<4x60xf32>
    %144 = arith.addf %141, %143 : vector<4x60xf32>
    %145 = arith.truncf %113 : vector<4x20xf32> to vector<4x20xbf16>
    %cst_47 = arith.constant dense<0.000000e+00> : vector<4x60xf32>
    %146 = tpu.matmul %145, %89, %cst_47 {dimension_numbers = #tpu.dot_dimension_numbers<[1], [0], [0], [1], [0, 0, 1, 1], [], []>} : vector<4x20xbf16>, vector<20x60xbf16>, vector<4x60xf32> -> vector<4x60xf32>
    %147 = vector.extract_strided_slice %144 {offsets = [0, 0], sizes = [4, 40], strides = [1, 1]} : vector<4x60xf32> to vector<4x40xf32>
    %148 = vector.extract_strided_slice %146 {offsets = [0, 0], sizes = [4, 40], strides = [1, 1]} : vector<4x60xf32> to vector<4x40xf32>
    %149 = arith.addf %147, %148 : vector<4x40xf32>
    %150 = arith.negf %149 : vector<4x40xf32>
    %151 = math.exp %150 : vector<4x40xf32>
    %cst_48 = arith.constant 1.000000e+00 : f32
    %152 = vector.broadcast %cst_48 : f32 to vector<4x40xf32>
    %153 = arith.addf %152, %151 : vector<4x40xf32>
    %154 = arith.divf %152, %153 : vector<4x40xf32>
    %155 = vector.extract_strided_slice %154 {offsets = [0, 0], sizes = [4, 20], strides = [1, 1]} : vector<4x40xf32> to vector<4x20xf32>
    %156 = vector.extract_strided_slice %154 {offsets = [0, 20], sizes = [4, 20], strides = [1, 1]} : vector<4x40xf32> to vector<4x20xf32>
    %157 = vector.extract_strided_slice %144 {offsets = [0, 40], sizes = [4, 20], strides = [1, 1]} : vector<4x60xf32> to vector<4x20xf32>
    %158 = vector.extract_strided_slice %146 {offsets = [0, 40], sizes = [4, 20], strides = [1, 1]} : vector<4x60xf32> to vector<4x20xf32>
    %159 = arith.extf %91 : vector<1x20xbf16> to vector<1x20xf32>
    %160 = vector.broadcast %159 : vector<1x20xf32> to vector<4x20xf32>
    %161 = arith.addf %158, %160 : vector<4x20xf32>
    %162 = arith.mulf %155, %161 : vector<4x20xf32>
    %163 = arith.addf %157, %162 : vector<4x20xf32>
    %164 = math.tanh %163 : vector<4x20xf32>
    %cst_49 = arith.constant 1.000000e+00 : f32
    %165 = vector.broadcast %cst_49 : f32 to vector<4x20xf32>
    %166 = arith.subf %165, %156 : vector<4x20xf32>
    %167 = arith.mulf %166, %164 : vector<4x20xf32>
    %168 = arith.mulf %156, %113 : vector<4x20xf32>
    %169 = arith.addf %167, %168 : vector<4x20xf32>
    %170 = vector.extract_strided_slice %109 {offsets = [4, 0], sizes = [4, 60], strides = [1, 1]} : vector<16x60xf32> to vector<4x60xf32>
    %171 = arith.truncf %139 : vector<4x20xf32> to vector<4x20xbf16>
    %cst_50 = arith.constant dense<0.000000e+00> : vector<4x60xf32>
    %172 = tpu.matmul %171, %85, %cst_50 {dimension_numbers = #tpu.dot_dimension_numbers<[1], [0], [0], [1], [0, 0, 1, 1], [], []>} : vector<4x20xbf16>, vector<20x60xbf16>, vector<4x60xf32> -> vector<4x60xf32>
    %173 = vector.extract_strided_slice %170 {offsets = [0, 0], sizes = [4, 40], strides = [1, 1]} : vector<4x60xf32> to vector<4x40xf32>
    %174 = vector.extract_strided_slice %172 {offsets = [0, 0], sizes = [4, 40], strides = [1, 1]} : vector<4x60xf32> to vector<4x40xf32>
    %175 = arith.addf %173, %174 : vector<4x40xf32>
    %176 = arith.negf %175 : vector<4x40xf32>
    %177 = math.exp %176 : vector<4x40xf32>
    %cst_51 = arith.constant 1.000000e+00 : f32
    %178 = vector.broadcast %cst_51 : f32 to vector<4x40xf32>
    %179 = arith.addf %178, %177 : vector<4x40xf32>
    %180 = arith.divf %178, %179 : vector<4x40xf32>
    %181 = vector.extract_strided_slice %180 {offsets = [0, 0], sizes = [4, 20], strides = [1, 1]} : vector<4x40xf32> to vector<4x20xf32>
    %182 = vector.extract_strided_slice %180 {offsets = [0, 20], sizes = [4, 20], strides = [1, 1]} : vector<4x40xf32> to vector<4x20xf32>
    %183 = vector.extract_strided_slice %170 {offsets = [0, 40], sizes = [4, 20], strides = [1, 1]} : vector<4x60xf32> to vector<4x20xf32>
    %184 = vector.extract_strided_slice %172 {offsets = [0, 40], sizes = [4, 20], strides = [1, 1]} : vector<4x60xf32> to vector<4x20xf32>
    %185 = arith.extf %87 : vector<1x20xbf16> to vector<1x20xf32>
    %186 = vector.broadcast %185 : vector<1x20xf32> to vector<4x20xf32>
    %187 = arith.addf %184, %186 : vector<4x20xf32>
    %188 = arith.mulf %181, %187 : vector<4x20xf32>
    %189 = arith.addf %183, %188 : vector<4x20xf32>
    %190 = math.tanh %189 : vector<4x20xf32>
    %cst_52 = arith.constant 1.000000e+00 : f32
    %191 = vector.broadcast %cst_52 : f32 to vector<4x20xf32>
    %192 = arith.subf %191, %182 : vector<4x20xf32>
    %193 = arith.mulf %192, %190 : vector<4x20xf32>
    %194 = arith.mulf %182, %139 : vector<4x20xf32>
    %195 = arith.addf %193, %194 : vector<4x20xf32>
    %196 = arith.truncf %195 : vector<4x20xf32> to vector<4x20xbf16>
    %cst_53 = arith.constant dense<0.000000e+00> : vector<4x60xf32>
    %197 = tpu.matmul %196, %88, %cst_53 {dimension_numbers = #tpu.dot_dimension_numbers<[1], [0], [0], [1], [0, 0, 1, 1], [], []>} : vector<4x20xbf16>, vector<20x60xbf16>, vector<4x60xf32> -> vector<4x60xf32>
    %198 = arith.extf %90 : vector<1x60xbf16> to vector<1x60xf32>
    %199 = vector.broadcast %198 : vector<1x60xf32> to vector<4x60xf32>
    %200 = arith.addf %197, %199 : vector<4x60xf32>
    %201 = arith.truncf %169 : vector<4x20xf32> to vector<4x20xbf16>
    %cst_54 = arith.constant dense<0.000000e+00> : vector<4x60xf32>
    %202 = tpu.matmul %201, %89, %cst_54 {dimension_numbers = #tpu.dot_dimension_numbers<[1], [0], [0], [1], [0, 0, 1, 1], [], []>} : vector<4x20xbf16>, vector<20x60xbf16>, vector<4x60xf32> -> vector<4x60xf32>
    %203 = vector.extract_strided_slice %200 {offsets = [0, 0], sizes = [4, 40], strides = [1, 1]} : vector<4x60xf32> to vector<4x40xf32>
    %204 = vector.extract_strided_slice %202 {offsets = [0, 0], sizes = [4, 40], strides = [1, 1]} : vector<4x60xf32> to vector<4x40xf32>
    %205 = arith.addf %203, %204 : vector<4x40xf32>
    %206 = arith.negf %205 : vector<4x40xf32>
    %207 = math.exp %206 : vector<4x40xf32>
    %cst_55 = arith.constant 1.000000e+00 : f32
    %208 = vector.broadcast %cst_55 : f32 to vector<4x40xf32>
    %209 = arith.addf %208, %207 : vector<4x40xf32>
    %210 = arith.divf %208, %209 : vector<4x40xf32>
    %211 = vector.extract_strided_slice %210 {offsets = [0, 0], sizes = [4, 20], strides = [1, 1]} : vector<4x40xf32> to vector<4x20xf32>
    %212 = vector.extract_strided_slice %210 {offsets = [0, 20], sizes = [4, 20], strides = [1, 1]} : vector<4x40xf32> to vector<4x20xf32>
    %213 = vector.extract_strided_slice %200 {offsets = [0, 40], sizes = [4, 20], strides = [1, 1]} : vector<4x60xf32> to vector<4x20xf32>
    %214 = vector.extract_strided_slice %202 {offsets = [0, 40], sizes = [4, 20], strides = [1, 1]} : vector<4x60xf32> to vector<4x20xf32>
    %215 = arith.extf %91 : vector<1x20xbf16> to vector<1x20xf32>
    %216 = vector.broadcast %215 : vector<1x20xf32> to vector<4x20xf32>
    %217 = arith.addf %214, %216 : vector<4x20xf32>
    %218 = arith.mulf %211, %217 : vector<4x20xf32>
    %219 = arith.addf %213, %218 : vector<4x20xf32>
    %220 = math.tanh %219 : vector<4x20xf32>
    %cst_56 = arith.constant 1.000000e+00 : f32
    %221 = vector.broadcast %cst_56 : f32 to vector<4x20xf32>
    %222 = arith.subf %221, %212 : vector<4x20xf32>
    %223 = arith.mulf %222, %220 : vector<4x20xf32>
    %224 = arith.mulf %212, %169 : vector<4x20xf32>
    %225 = arith.addf %223, %224 : vector<4x20xf32>
    %226 = vector.extract_strided_slice %109 {offsets = [8, 0], sizes = [4, 60], strides = [1, 1]} : vector<16x60xf32> to vector<4x60xf32>
    %227 = arith.truncf %195 : vector<4x20xf32> to vector<4x20xbf16>
    %cst_57 = arith.constant dense<0.000000e+00> : vector<4x60xf32>
    %228 = tpu.matmul %227, %85, %cst_57 {dimension_numbers = #tpu.dot_dimension_numbers<[1], [0], [0], [1], [0, 0, 1, 1], [], []>} : vector<4x20xbf16>, vector<20x60xbf16>, vector<4x60xf32> -> vector<4x60xf32>
    %229 = vector.extract_strided_slice %226 {offsets = [0, 0], sizes = [4, 40], strides = [1, 1]} : vector<4x60xf32> to vector<4x40xf32>
    %230 = vector.extract_strided_slice %228 {offsets = [0, 0], sizes = [4, 40], strides = [1, 1]} : vector<4x60xf32> to vector<4x40xf32>
    %231 = arith.addf %229, %230 : vector<4x40xf32>
    %232 = arith.negf %231 : vector<4x40xf32>
    %233 = math.exp %232 : vector<4x40xf32>
    %cst_58 = arith.constant 1.000000e+00 : f32
    %234 = vector.broadcast %cst_58 : f32 to vector<4x40xf32>
    %235 = arith.addf %234, %233 : vector<4x40xf32>
    %236 = arith.divf %234, %235 : vector<4x40xf32>
    %237 = vector.extract_strided_slice %236 {offsets = [0, 0], sizes = [4, 20], strides = [1, 1]} : vector<4x40xf32> to vector<4x20xf32>
    %238 = vector.extract_strided_slice %236 {offsets = [0, 20], sizes = [4, 20], strides = [1, 1]} : vector<4x40xf32> to vector<4x20xf32>
    %239 = vector.extract_strided_slice %226 {offsets = [0, 40], sizes = [4, 20], strides = [1, 1]} : vector<4x60xf32> to vector<4x20xf32>
    %240 = vector.extract_strided_slice %228 {offsets = [0, 40], sizes = [4, 20], strides = [1, 1]} : vector<4x60xf32> to vector<4x20xf32>
    %241 = arith.extf %87 : vector<1x20xbf16> to vector<1x20xf32>
    %242 = vector.broadcast %241 : vector<1x20xf32> to vector<4x20xf32>
    %243 = arith.addf %240, %242 : vector<4x20xf32>
    %244 = arith.mulf %237, %243 : vector<4x20xf32>
    %245 = arith.addf %239, %244 : vector<4x20xf32>
    %246 = math.tanh %245 : vector<4x20xf32>
    %cst_59 = arith.constant 1.000000e+00 : f32
    %247 = vector.broadcast %cst_59 : f32 to vector<4x20xf32>
    %248 = arith.subf %247, %238 : vector<4x20xf32>
    %249 = arith.mulf %248, %246 : vector<4x20xf32>
    %250 = arith.mulf %238, %195 : vector<4x20xf32>
    %251 = arith.addf %249, %250 : vector<4x20xf32>
    %252 = arith.truncf %251 : vector<4x20xf32> to vector<4x20xbf16>
    %cst_60 = arith.constant dense<0.000000e+00> : vector<4x60xf32>
    %253 = tpu.matmul %252, %88, %cst_60 {dimension_numbers = #tpu.dot_dimension_numbers<[1], [0], [0], [1], [0, 0, 1, 1], [], []>} : vector<4x20xbf16>, vector<20x60xbf16>, vector<4x60xf32> -> vector<4x60xf32>
    %254 = arith.extf %90 : vector<1x60xbf16> to vector<1x60xf32>
    %255 = vector.broadcast %254 : vector<1x60xf32> to vector<4x60xf32>
    %256 = arith.addf %253, %255 : vector<4x60xf32>
    %257 = arith.truncf %225 : vector<4x20xf32> to vector<4x20xbf16>
    %cst_61 = arith.constant dense<0.000000e+00> : vector<4x60xf32>
    %258 = tpu.matmul %257, %89, %cst_61 {dimension_numbers = #tpu.dot_dimension_numbers<[1], [0], [0], [1], [0, 0, 1, 1], [], []>} : vector<4x20xbf16>, vector<20x60xbf16>, vector<4x60xf32> -> vector<4x60xf32>
    %259 = vector.extract_strided_slice %256 {offsets = [0, 0], sizes = [4, 40], strides = [1, 1]} : vector<4x60xf32> to vector<4x40xf32>
    %260 = vector.extract_strided_slice %258 {offsets = [0, 0], sizes = [4, 40], strides = [1, 1]} : vector<4x60xf32> to vector<4x40xf32>
    %261 = arith.addf %259, %260 : vector<4x40xf32>
    %262 = arith.negf %261 : vector<4x40xf32>
    %263 = math.exp %262 : vector<4x40xf32>
    %cst_62 = arith.constant 1.000000e+00 : f32
    %264 = vector.broadcast %cst_62 : f32 to vector<4x40xf32>
    %265 = arith.addf %264, %263 : vector<4x40xf32>
    %266 = arith.divf %264, %265 : vector<4x40xf32>
    %267 = vector.extract_strided_slice %266 {offsets = [0, 0], sizes = [4, 20], strides = [1, 1]} : vector<4x40xf32> to vector<4x20xf32>
    %268 = vector.extract_strided_slice %266 {offsets = [0, 20], sizes = [4, 20], strides = [1, 1]} : vector<4x40xf32> to vector<4x20xf32>
    %269 = vector.extract_strided_slice %256 {offsets = [0, 40], sizes = [4, 20], strides = [1, 1]} : vector<4x60xf32> to vector<4x20xf32>
    %270 = vector.extract_strided_slice %258 {offsets = [0, 40], sizes = [4, 20], strides = [1, 1]} : vector<4x60xf32> to vector<4x20xf32>
    %271 = arith.extf %91 : vector<1x20xbf16> to vector<1x20xf32>
    %272 = vector.broadcast %271 : vector<1x20xf32> to vector<4x20xf32>
    %273 = arith.addf %270, %272 : vector<4x20xf32>
    %274 = arith.mulf %267, %273 : vector<4x20xf32>
    %275 = arith.addf %269, %274 : vector<4x20xf32>
    %276 = math.tanh %275 : vector<4x20xf32>
    %cst_63 = arith.constant 1.000000e+00 : f32
    %277 = vector.broadcast %cst_63 : f32 to vector<4x20xf32>
    %278 = arith.subf %277, %268 : vector<4x20xf32>
    %279 = arith.mulf %278, %276 : vector<4x20xf32>
    %280 = arith.mulf %268, %225 : vector<4x20xf32>
    %281 = arith.addf %279, %280 : vector<4x20xf32>
    %282 = vector.extract_strided_slice %109 {offsets = [12, 0], sizes = [4, 60], strides = [1, 1]} : vector<16x60xf32> to vector<4x60xf32>
    %283 = arith.truncf %251 : vector<4x20xf32> to vector<4x20xbf16>
    %cst_64 = arith.constant dense<0.000000e+00> : vector<4x60xf32>
    %284 = tpu.matmul %283, %85, %cst_64 {dimension_numbers = #tpu.dot_dimension_numbers<[1], [0], [0], [1], [0, 0, 1, 1], [], []>} : vector<4x20xbf16>, vector<20x60xbf16>, vector<4x60xf32> -> vector<4x60xf32>
    %285 = vector.extract_strided_slice %282 {offsets = [0, 0], sizes = [4, 40], strides = [1, 1]} : vector<4x60xf32> to vector<4x40xf32>
    %286 = vector.extract_strided_slice %284 {offsets = [0, 0], sizes = [4, 40], strides = [1, 1]} : vector<4x60xf32> to vector<4x40xf32>
    %287 = arith.addf %285, %286 : vector<4x40xf32>
    %288 = arith.negf %287 : vector<4x40xf32>
    %289 = math.exp %288 : vector<4x40xf32>
    %cst_65 = arith.constant 1.000000e+00 : f32
    %290 = vector.broadcast %cst_65 : f32 to vector<4x40xf32>
    %291 = arith.addf %290, %289 : vector<4x40xf32>
    %292 = arith.divf %290, %291 : vector<4x40xf32>
    %293 = vector.extract_strided_slice %292 {offsets = [0, 0], sizes = [4, 20], strides = [1, 1]} : vector<4x40xf32> to vector<4x20xf32>
    %294 = vector.extract_strided_slice %292 {offsets = [0, 20], sizes = [4, 20], strides = [1, 1]} : vector<4x40xf32> to vector<4x20xf32>
    %295 = vector.extract_strided_slice %282 {offsets = [0, 40], sizes = [4, 20], strides = [1, 1]} : vector<4x60xf32> to vector<4x20xf32>
    %296 = vector.extract_strided_slice %284 {offsets = [0, 40], sizes = [4, 20], strides = [1, 1]} : vector<4x60xf32> to vector<4x20xf32>
    %297 = arith.extf %87 : vector<1x20xbf16> to vector<1x20xf32>
    %298 = vector.broadcast %297 : vector<1x20xf32> to vector<4x20xf32>
    %299 = arith.addf %296, %298 : vector<4x20xf32>
    %300 = arith.mulf %293, %299 : vector<4x20xf32>
    %301 = arith.addf %295, %300 : vector<4x20xf32>
    %302 = math.tanh %301 : vector<4x20xf32>
    %cst_66 = arith.constant 1.000000e+00 : f32
    %303 = vector.broadcast %cst_66 : f32 to vector<4x20xf32>
    %304 = arith.subf %303, %294 : vector<4x20xf32>
    %305 = arith.mulf %304, %302 : vector<4x20xf32>
    %306 = arith.mulf %294, %251 : vector<4x20xf32>
    %307 = arith.addf %305, %306 : vector<4x20xf32>
    %308 = arith.truncf %307 : vector<4x20xf32> to vector<4x20xbf16>
    %cst_67 = arith.constant dense<0.000000e+00> : vector<4x60xf32>
    %309 = tpu.matmul %308, %88, %cst_67 {dimension_numbers = #tpu.dot_dimension_numbers<[1], [0], [0], [1], [0, 0, 1, 1], [], []>} : vector<4x20xbf16>, vector<20x60xbf16>, vector<4x60xf32> -> vector<4x60xf32>
    %310 = arith.extf %90 : vector<1x60xbf16> to vector<1x60xf32>
    %311 = vector.broadcast %310 : vector<1x60xf32> to vector<4x60xf32>
    %312 = arith.addf %309, %311 : vector<4x60xf32>
    %313 = arith.truncf %281 : vector<4x20xf32> to vector<4x20xbf16>
    %cst_68 = arith.constant dense<0.000000e+00> : vector<4x60xf32>
    %314 = tpu.matmul %313, %89, %cst_68 {dimension_numbers = #tpu.dot_dimension_numbers<[1], [0], [0], [1], [0, 0, 1, 1], [], []>} : vector<4x20xbf16>, vector<20x60xbf16>, vector<4x60xf32> -> vector<4x60xf32>
    %315 = vector.extract_strided_slice %312 {offsets = [0, 0], sizes = [4, 40], strides = [1, 1]} : vector<4x60xf32> to vector<4x40xf32>
    %316 = vector.extract_strided_slice %314 {offsets = [0, 0], sizes = [4, 40], strides = [1, 1]} : vector<4x60xf32> to vector<4x40xf32>
    %317 = arith.addf %315, %316 : vector<4x40xf32>
    %318 = arith.negf %317 : vector<4x40xf32>
    %319 = math.exp %318 : vector<4x40xf32>
    %cst_69 = arith.constant 1.000000e+00 : f32
    %320 = vector.broadcast %cst_69 : f32 to vector<4x40xf32>
    %321 = arith.addf %320, %319 : vector<4x40xf32>
    %322 = arith.divf %320, %321 : vector<4x40xf32>
    %323 = vector.extract_strided_slice %322 {offsets = [0, 0], sizes = [4, 20], strides = [1, 1]} : vector<4x40xf32> to vector<4x20xf32>
    %324 = vector.extract_strided_slice %322 {offsets = [0, 20], sizes = [4, 20], strides = [1, 1]} : vector<4x40xf32> to vector<4x20xf32>
    %325 = vector.extract_strided_slice %312 {offsets = [0, 40], sizes = [4, 20], strides = [1, 1]} : vector<4x60xf32> to vector<4x20xf32>
    %326 = vector.extract_strided_slice %314 {offsets = [0, 40], sizes = [4, 20], strides = [1, 1]} : vector<4x60xf32> to vector<4x20xf32>
    %327 = arith.extf %91 : vector<1x20xbf16> to vector<1x20xf32>
    %328 = vector.broadcast %327 : vector<1x20xf32> to vector<4x20xf32>
    %329 = arith.addf %326, %328 : vector<4x20xf32>
    %330 = arith.mulf %323, %329 : vector<4x20xf32>
    %331 = arith.addf %325, %330 : vector<4x20xf32>
    %332 = math.tanh %331 : vector<4x20xf32>
    %cst_70 = arith.constant 1.000000e+00 : f32
    %333 = vector.broadcast %cst_70 : f32 to vector<4x20xf32>
    %334 = arith.subf %333, %324 : vector<4x20xf32>
    %335 = arith.mulf %334, %332 : vector<4x20xf32>
    %336 = arith.mulf %324, %281 : vector<4x20xf32>
    %337 = arith.addf %335, %336 : vector<4x20xf32>
    %338 = tpu.concatenate %169, %225, %281, %337 in 0 : vector<4x20xf32>, vector<4x20xf32>, vector<4x20xf32>, vector<4x20xf32> -> vector<16x20xf32>
    %339 = arith.truncf %338 : vector<16x20xf32> to vector<16x20xbf16>
    %c152 = arith.constant 152 : index
    %c0_71 = arith.constant 0 : index
    %340 = vector.load %arg3[%c152, %c0_71] : memref<184x128xbf16, #tpu.memory_space<vmem>>, vector<20x2xbf16>
    %cst_72 = arith.constant dense<0.000000e+00> : vector<16x2xf32>
    %341 = tpu.matmul %339, %340, %cst_72 {dimension_numbers = #tpu.dot_dimension_numbers<[1], [0], [0], [1], [0, 0, 1, 1], [], []>} : vector<16x20xbf16>, vector<20x2xbf16>, vector<16x2xf32> -> vector<16x2xf32>
    %c176 = arith.constant 176 : index
    %c0_73 = arith.constant 0 : index
    %342 = vector.load %arg3[%c176, %c0_73] : memref<184x128xbf16, #tpu.memory_space<vmem>>, vector<1x2xbf16>
    %343 = arith.extf %342 : vector<1x2xbf16> to vector<1x2xf32>
    %344 = vector.broadcast %343 : vector<1x2xf32> to vector<16x2xf32>
    %345 = arith.addf %341, %344 : vector<16x2xf32>
    %346 = arith.negf %345 : vector<16x2xf32>
    %347 = math.exp %346 : vector<16x2xf32>
    %cst_74 = arith.constant 1.000000e+00 : f32
    %348 = vector.broadcast %cst_74 : f32 to vector<16x2xf32>
    %349 = arith.addf %348, %347 : vector<16x2xf32>
    %350 = arith.divf %348, %349 : vector<16x2xf32>
    %cst_75 = arith.constant 0.000000e+00 : f32
    %351 = vector.broadcast %cst_75 : f32 to vector<16x18xf32>
    %352 = tpu.concatenate %350, %351 in 1 : vector<16x2xf32>, vector<16x18xf32> -> vector<16x20xf32>
    %353 = tpu.concatenate %352, %307, %337 in 0 : vector<16x20xf32>, vector<4x20xf32>, vector<4x20xf32> -> vector<24x20xf32>
    %c0_76 = arith.constant 0 : index
    %c0_77 = arith.constant 0 : index
    %354 = vector.load %arg4[%c0_76, %c0_77] : memref<24x20xf32, #tpu.memory_space<vmem>>, vector<24x20xf32>
    tpu.vector_store %arg4[%c0_76, %c0_77], %353 {strides = array<i32>} : memref<24x20xf32, #tpu.memory_space<vmem>>, vector<24x20xf32>,
    return
  }
}

</mosaic_0001>

<bundles_post_ra>
// kernel: cnn_gru_forward.1
= control target key start
LH: loop header
LB: loop body
LE: loop exit
PB: predicated region body
PF: predicated region fallthrough
CT: control target
= control target key end

     0   :  { %9 = vsyncpa [#allocation3], 0  ;;  %s1945_s15 = smov [#allocation2]   ;;  %s2416_s0 = inlined_call_operand.vmem [shape: f32[4,8,12], index: 0, kind: input, shape index: {}]   ;;  %s2417_s1 = inlined_call_operand.vmem [shape: f32[4,6,10], index: 1, kind: input, shape index: {}]   ;;  %s2418_s2 = inlined_call_operand.vmem [shape: f32[2,4,20], index: 2, kind: input, shape index: {}]   ;;  %s2419_s3 = inlined_call_operand.hbm [shape: bf16[184,128], index: 3, kind: input, shape index: {}]   ;;  %s2420_s4 = inlined_call_operand.vmem [shape: f32[24,20], index: 4, kind: output, shape index: {}]  }
   0x1   :  { %s21_s16 = sshll.u32 %s1945_s15, 4  ;;  %s1921_s19 = scalar_lea.hbm %s2419_s3, 1472  ;;  %s22_s16 = int_to_ptr.vmem [resolvable:$true] %s21_s16 }
   0x2   :  { %p1922_p0 = scmp.ne.s32.totalorder %s2419_s3, %s1921_s19  ;;  %p1925_p1 = scmp.lt.u32.totalorder %s1921_s19, %s2419_s3 }
   0x4   :  { %p1927_p2 = pnand %p1925_p1, %p1922_p0 }
   0x6   :  { %1930 = shalt.err (!%p1927_p2)
}
   0x7   :  { %s1931_s24 = scalar_lea.vmem %s22_s16, 1472  ;;  %p1936_p4 = scmp.lt.s32.totalorder %s22_s16, %s22_s16 }
   0x8   :  { %p1932_p3 = scmp.ne.s32.totalorder %s22_s16, %s1931_s24  ;;  %p1937_p5 = scmp.lt.s32.totalorder %s1931_s24, %s1931_s24 }
   0xa   :  { %p1938_p6 = por %p1937_p5, %p1936_p4 }
   0xc   :  { %p1939_p7 = pnand %p1938_p6, %p1932_p3 }
   0xe   :  { %1942 = shalt.err (!%p1939_p7)
}
   0xf   :  { %s1946_s25 = smov 64   ;;  %s1947_s26 = smov 4  }
  0x10   :  { %27 = dma.hbm_to_vmem [thread:$0]  %s2419_s3, 1472, %s22_s16, [#allocation3], %s1946_s25, %s1946_s25, %s1947_s26  }
  0x11   :  { %1943 = dma.done.wait [#allocation3], 1472  }
  0x12   :  { %1944 = vsyncadd [#allocation3], 4294965824  ;;  %v2010_v0 = vld [vmem:[%s2416_s0 + $0x8] sm:$0xff]  ;;  %v1465_v1 = vld [vmem:[%s2416_s0 + $0x10] sm:$0xff]  ;;  %s1948_s14 = smov 125   ;;  %s1949_s15 = smov 127  }
  0x13   :  { %v2018_v2 = vld [vmem:[%s2417_s1 + $0x8] sm:$0x3f]  ;;  %v1712_v3 = vpack.i.bf16 %v1465_v1, %v2010_v0  ;;  %v2025_v5 = vld [vmem:[%s2416_s0 + $0x18] sm:$0xff]  ;;  %v2031_v7 = vld [vmem:[%s2417_s1 + $0x10] sm:$0x3f]  ;;  %s1950_s16 = smov 126  }
  0x14   :  { %v232_v4 = vrot.slane %v2018_v2, 4  ;;  %v228_v6 = vrot.slane %v2018_v2, 2  ;;  %v252_v8 = vrot.slane %v2031_v7, 4  ;;  %v2037_v9 = vld [vmem:[%s2417_s1 + $0x18] sm:$0x3f]  ;;  %v248_v12 = vrot.slane %v2031_v7, 2 }
  0x15   :  { %1713 = vrot.lane.b32.xlu1 %v1712_v3, %s1948_s14  ;;  %1708 = vrot.lane.b32.xlu0 %v1712_v3, %s1949_s15  ;;  %v268_v13 = vrot.slane %v2037_v9, 2  ;;  %v236_v16 = vrot.slane %v2018_v2, 6  ;;  %v272_v17 = vrot.slane %v2037_v9, 4  ;;  %v256_v20 = vrot.slane %v2031_v7, 6  ;;  %v2062_v24 = vld [vmem:[%s2417_s1] sm:$0x3f] }
  0x16   :  { %v1722_v10 = vpack.i.bf16 %v2010_v0, %v232_v4  ;;  %v1717_v11 = vpack.i.bf16 %v228_v6, %v2025_v5  ;;  %v1732_v14 = vpack.i.bf16 %v1465_v1, %v252_v8  ;;  %v276_v21 = vrot.slane %v2037_v9, 6  ;;  %s1951_s19 = smov 124   ;;  %v2074_v29 = vld [vmem:[%s2416_s0] sm:$0xff]  ;;  %s1953_s0 = smov 8  }
  0x17   :  { %v1727_v15 = vpack.i.bf16 %v268_v13, %v248_v12  ;;  %v1742_v18 = vpack.i.bf16 %v236_v16, %v2025_v5  ;;  %v1737_v19 = vpack.i.bf16 %v2025_v5, %v272_v17  ;;  %v1747_v23 = vpack.i.bf16 %v2018_v2, %v2010_v0  ;;  %s1954_s1 = smov 16   ;;  %s1955_s22 = smov 24  }
  0x18   :  { %v1752_v22 = vpack.i.bf16 %v276_v21, %v256_v20  ;;  %v1762_v25 = vpack.i.bf16 %v2037_v9, %v2025_v5  ;;  %v1757_v26 = vpack.i.bf16 %v2031_v7, %v1465_v1  ;;  %v205_v27 = vrot.slane %v2062_v24, 2  ;;  %s1956_s23 = smov 6   ;;  %s1957_s24 = smov 12  }
  0x19   :  { %1723 = vrot.lane.b32.xlu1 %v1722_v10, %s1950_s16  ;;  %1718 = vrot.lane.b32.xlu0 %v1717_v11, %s1949_s15  ;;  %v213_v28 = vrot.slane %v2062_v24, 6  ;;  %v209_v31 = vrot.slane %v2062_v24, 4  ;;  %v1782_v34 = vpack.i.bf16 %v2062_v24, %v2074_v29  ;;  %v1952_v37 = vmov 0.0   ;;  %s1958_s25 = smov 18   ;;  %s1961_s28 = smov 2  }
  0x1a   :  { %v1767_v30 = vpack.i.bf16 %v205_v27, %v2074_v29  ;;  %1554 = vmatprep.subr.bf16.mxu0 %v1952_v37  ;;  %1564 = vmatprep.subr.bf16.mxu1 %v1952_v37  ;;  %vm223_vm0 = vcmask 1041408   ;;  %vm220_vm1 = vcmask 1045504   ;;  %vm157_vm2 = vcmask 1043456   ;;  %s1962_s29 = smov 118   ;;  %s1963_s30 = smov 120  }
  0x1b   :  { %v1777_v32 = vpack.i.bf16 %v213_v28, %v2074_v29  ;;  %v1772_v33 = vpack.i.bf16 %v2074_v29, %v209_v31  ;;  %vm1959_vm3 = vmmov 0   ;;  %v146_v31 = vld [vmem:[#allocation2 + $0x4] sm:$0x3]  ;;  %vm125_vm4 = vcmask 64512   ;;  %s1964_s5 = smov 112   ;;  %s1965_s6 = smov 104  }
  0x1c   :  { %1560 = vmatprep.mubr.msk.bf16.mxu0 %vm1959_vm3, %v1952_v37  ;;  %1568 = vmatprep.mubr.msk.bf16.mxu1 %vm1959_vm3, %v1952_v37  ;;  %vm131_vm5 = vcmask 130048   ;;  %vm137_vm6 = vcmask 195584   ;;  %vm330_vm7 = vcmask 48128   ;;  %vm335_vm8 = vcmask 97280   ;;  %s1966_s7 = smov 40   ;;  %s1967_s8 = smov 88  }
  0x1d   :  { %1733 = vrot.lane.b32.xlu1 %v1732_v14, %s1950_s16  ;;  %1728 = vrot.lane.b32.xlu0 %v1727_v15, %s1949_s15  ;;  %vm340_vm9 = vcmask 146432   ;;  %vm358_vm10 = vcmask 1046528   ;;  %vm153_vm11 = vcmask 326656   ;;  %vm354_vm12 = vcmask 244736   ;;  %s1968_s3 = smov 20  }
  0x1e   :  { %vm525_vm13 = vcmask 162816   ;;  %vm464_vm14 = vcmask 113664   ;;  %vm1444_vm15 = vcmask 15360  }
  0x21   :  { %1743 = vrot.lane.b32.xlu1 %v1742_v18, %s1948_s14  ;;  %1738 = vrot.lane.b32.xlu0 %v1737_v19, %s1950_s16 }
  0x25   :  { %1753 = vrot.lane.b32.xlu1 %v1752_v22, %s1948_s14  ;;  %1748 = vrot.lane.b32.xlu0 %v1747_v23, %s1951_s19 }
  0x29   :  { %1763 = vrot.lane.b32.xlu1 %v1762_v25, %s1951_s19  ;;  %1758 = vrot.lane.b32.xlu0 %v1757_v26, %s1951_s19 }
  0x2d   :  { %1768 = vrot.lane.b32.xlu0 %v1767_v30, %s1949_s15  ;;  %1778 = vrot.lane.b32.xlu1 %v1777_v32, %s1948_s14  ;;  %v347_v32 = vld [vmem:[#allocation2 + $0xc] sm:$0x3] }
  0x31   :  { %1773 = vrot.lane.b32.xlu0 %v1772_v33, %s1950_s16  ;;  %v147_v33 = vunpack.c.l.bf16 %v146_v31 }
  0x35   :  { %1783 = vrot.lane.b32.xlu0 %v1782_v34, %s1951_s19  ;;  %v348_v34 = vunpack.c.l.bf16 %v347_v32 }
  0x87   :  { %v1714_v35 = vpop.permute.xlu1 %1713  ;;  %v1709_v36 = vpop.permute.xlu0 %1708 }
  0x88   :  { %v1711_v38 = vunpack.i.h.bf16 %v1709_v36  ;;  %v1710_v39 = vunpack.i.l.bf16 %v1709_v36  ;;  %v1715_v40 = vunpack.i.l.bf16 %v1714_v35  ;;  %v1716_v47 = vunpack.i.h.bf16 %v1714_v35 }
  0x89   :  { %v1960_v35 = vmov 0  }
  0x8a   :  { %v1792_v41 = vpack.i.bf16 %v1711_v38, %v1465_v1  ;;  %v1787_v42 = vpack.i.bf16 %v1710_v39, %v2010_v0  ;;  %1853 = vset.pattern.permute.xlu0 %v1960_v35  ;;  %1847 = vset.pattern.permute.xlu1 %v1960_v35 }
  0x8b   :  { %v1724_v43 = vpop.permute.xlu1 %1723  ;;  %v1719_v44 = vpop.permute.xlu0 %1718 }
  0x8c   :  { %v1726_v45 = vunpack.i.h.bf16 %v1724_v43  ;;  %v1720_v46 = vunpack.i.l.bf16 %v1719_v44  ;;  %1788 = vrot.lane.b32.xlu1 %v1787_v42, %s1953_s0  ;;  %1793 = vrot.lane.b32.xlu0 %v1792_v41, %s1954_s1  ;;  %v1725_v60 = vunpack.i.l.bf16 %v1724_v43  ;;  %v1721_v63 = vunpack.i.h.bf16 %v1719_v44 }
  0x8e   :  { %v1802_v48 = vpack.i.bf16 %v1715_v40, %v1726_v45  ;;  %v1797_v49 = vpack.i.bf16 %v1720_v46, %v2025_v5  ;;  %v242_v13 = vsel %vm220_vm1, %v2018_v2, %v1721_v63  ;;  %v243_v17 = vsel %vm157_vm2, %v1721_v63, %v1725_v60 }
  0x8f   :  { %v1734_v50 = vpop.permute.xlu1 %1733  ;;  %v1729_v51 = vpop.permute.xlu0 %1728  ;;  %v1817_v21 = vpack.i.bf16 %v243_v17, %v242_v13 }
  0x90   :  { %v1736_v52 = vunpack.i.h.bf16 %v1734_v50  ;;  %1798 = vrot.lane.b32.xlu1 %v1797_v49, %s1955_s22  ;;  %1803 = vrot.lane.b32.xlu0 %v1802_v48, %s1953_s0  ;;  %v1735_v6 = vunpack.i.l.bf16 %v1734_v50  ;;  %v1730_v14 = vunpack.i.l.bf16 %v1729_v51  ;;  %v1731_v26 = vunpack.i.h.bf16 %v1729_v51 }
  0x92   :  { %v1807_v53 = vpack.i.bf16 %v1716_v47, %v1736_v52  ;;  %v262_v23 = vsel %vm220_vm1, %v2031_v7, %v1730_v14  ;;  %v263_v2 = vsel %vm157_vm2, %v1730_v14, %v1735_v6  ;;  %v282_v30 = vsel %vm220_vm1, %v2037_v9, %v1731_v26 }
  0x93   :  { %v1744_v54 = vpop.permute.xlu1 %1743  ;;  %v1739_v55 = vpop.permute.xlu0 %1738  ;;  %v1822_v27 = vpack.i.bf16 %v263_v2, %v262_v23  ;;  %v1848_v9 = vpack.i.bf16 %v348_v34, %v147_v33 }
  0x94   :  { %v1745_v56 = vunpack.i.l.bf16 %v1744_v54  ;;  %v1741_v57 = vunpack.i.h.bf16 %v1739_v55  ;;  %1808 = vrot.lane.b32.xlu0 %v1807_v53, %s1954_s1  ;;  %v1746_v58 = vunpack.i.h.bf16 %v1744_v54  ;;  %v1740_v20 = vunpack.i.l.bf16 %v1739_v55 }
  0x96   :  { %v1812_v59 = vpack.i.bf16 %v1745_v56, %v1741_v57  ;;  %v244_v4 = vsel %vm223_vm0, %v1725_v60, %v1746_v58  ;;  %v283_v28 = vsel %vm157_vm2, %v1731_v26, %v1740_v20 }
  0x97   :  { %v1754_v61 = vpop.permute.xlu1 %1753  ;;  %v1749_v62 = vpop.permute.xlu0 %1748  ;;  %v1827_v7 = vpack.i.bf16 %v283_v28, %v282_v30 }
  0x98   :  { %v1751_v0 = vunpack.i.h.bf16 %v1749_v62  ;;  %v1750_v1 = vunpack.i.l.bf16 %v1749_v62  ;;  %1813 = vrot.lane.b32.xlu0 %v1812_v59, %s1955_s22  ;;  %v1755_v3 = vunpack.i.l.bf16 %v1754_v61  ;;  %v1756_v15 = vunpack.i.h.bf16 %v1754_v61 }
  0x9a   :  { %v1832_v5 = vpack.i.bf16 %v1751_v0, %v244_v4  ;;  %88 = vrot.lane.b32.xlu1 %v1750_v1, %s1953_s0  ;;  %v264_v16 = vsel %vm223_vm0, %v1735_v6, %v1755_v3  ;;  %v284_v22 = vsel %vm223_vm0, %v1740_v20, %v1756_v15 }
  0x9b   :  { %v1764_v8 = vpop.permute.xlu1 %1763  ;;  %v1759_v10 = vpop.permute.xlu0 %1758 }
  0x9c   :  { %v1761_v11 = vunpack.i.h.bf16 %v1759_v10  ;;  %v1760_v12 = vunpack.i.l.bf16 %v1759_v10  ;;  %1833 = vrot.lane.b32.xlu0 %v1832_v5, %s1956_s23  ;;  %v1766_v18 = vunpack.i.h.bf16 %v1764_v8  ;;  %v1765_v36 = vunpack.i.l.bf16 %v1764_v8 }
  0x9e   :  { %v1837_v19 = vpack.i.bf16 %v1761_v11, %v264_v16  ;;  %103 = vrot.lane.b32.xlu1 %v1760_v12, %s1954_s1  ;;  %v1842_v25 = vpack.i.bf16 %v1766_v18, %v284_v22 }
  0x9f   :  { %v2117_v38 = vpop.permute.xlu0 %1768  ;;  %v1779_v40 = vpop.permute.xlu1 %1778 }
  0xa0   :  { %1838 = vrot.lane.b32.xlu0 %v1837_v19, %s1957_s24  ;;  %v1770_v44 = vunpack.i.l.bf16 %v2117_v38  ;;  %v1780_v1 = vunpack.i.l.bf16 %v1779_v40  ;;  %v1781_v20 = vunpack.i.h.bf16 %v1779_v40 }
  0xa2   :  { %1818 = vrot.lane.b32.xlu1 %v1817_v21, %s1956_s23  ;;  %v1771_v21 = vunpack.i.h.bf16 %v2117_v38 }
  0xa3   :  { %v2119_v39 = vpop.permute.xlu0 %1773 }
  0xa4   :  { %1843 = vrot.lane.b32.xlu0 %v1842_v25, %s1958_s25  ;;  %v1776_v0 = vunpack.i.h.bf16 %v2119_v39  ;;  %v1775_v22 = vunpack.i.l.bf16 %v2119_v39 }
  0xa6   :  { %1823 = vrot.lane.b32.xlu1 %v1822_v27, %s1957_s24  ;;  %v224_v30 = vsel %vm223_vm0, %v1775_v22, %v1781_v20  ;;  %v222_v40 = vsel %vm157_vm2, %v1771_v21, %v1775_v22 }
  0xa7   :  { %v2121_v41 = vpop.permute.xlu0 %1783 }
  0xaa   :  { %1828 = vrot.lane.b32.xlu1 %v1827_v7, %s1958_s25  ;;  %v1786_v7 = vunpack.i.h.bf16 %v2121_v41 }
  0xae   :  { %118 = vrot.lane.b32.xlu1 %v1765_v36, %s1955_s22 }
  0xb2   :  { %1849 = vperm.xlu1 %1847, %v1848_v9   ;;  %v221_v9 = vsel %vm220_vm1, %v2062_v24, %v1771_v21 }
  0xfe   :  { %v1789_v42 = vpop.permute.xlu1 %1788  ;;  %v1794_v43 = vpop.permute.xlu0 %1793 }
  0xff   :  { %v1791_v45 = vunpack.i.h.bf16 %v1789_v42  ;;  %v1790_v46 = vunpack.i.l.bf16 %v1789_v42  ;;  %v1796_v47 = vunpack.i.h.bf16 %v1794_v43  ;;  %v1795_v48 = vunpack.i.l.bf16 %v1794_v43 }
 0x100   :  { %v1785_v42 = vunpack.i.l.bf16 %v2121_v41 }
 0x101   :  { %v126_v49 = vsel %vm125_vm4, %v2074_v29, %v1790_v46  ;;  %v127_v50 = vsel %vm125_vm4, %v1770_v44, %v1791_v45 }
 0x102   :  { %v1799_v51 = vpop.permute.xlu1 %1798  ;;  %v1804_v52 = vpop.permute.xlu0 %1803  ;;  %v132_v55 = vsel %vm131_vm5, %v126_v49, %v1795_v48  ;;  %v133_v56 = vsel %vm131_vm5, %v127_v50, %v1796_v47 }
 0x103   :  { %v1801_v53 = vunpack.i.h.bf16 %v1799_v51  ;;  %v1800_v54 = vunpack.i.l.bf16 %v1799_v51  ;;  %v1806_v61 = vunpack.i.h.bf16 %v1804_v52  ;;  %v1805_v29 = vunpack.i.l.bf16 %v1804_v52 }
 0x105   :  { %v138_v57 = vsel %vm137_vm6, %v132_v55, %v1800_v54  ;;  %v139_v58 = vsel %vm137_vm6, %v133_v56, %v1801_v53  ;;  %v129_v4 = vsel %vm125_vm4, %v1780_v1, %v1806_v61  ;;  %v128_v5 = vsel %vm125_vm4, %v1776_v0, %v1805_v29  ;;  %v2172_v0 = vld [vmem:[#allocation2 + $0x18] sm:$0xff]   ;;  %v1855_v1 = vld [vmem:[#allocation2 + $0x20] ss:$0 sps:$4 sm:$0x33]  }
 0x106   :  { %v1809_v59 = vpop.permute.xlu0 %1808  ;;  %v143_v60 = vpack.c.bf16 %v139_v58, %v138_v57 }
 0x107   :  { %v1811_v62 = vunpack.i.h.bf16 %v1809_v59  ;;  %v1810_v63 = vunpack.i.l.bf16 %v1809_v59 }
 0x108   :  { %1555 = vmatpush3.bf16.msra.mxu0 %v143_v60 }
 0x109   :  { %1556 = vmatprep.subr.bf16.mxu0 %v1952_v37  ;;  %v134_v10 = vsel %vm131_vm5, %v128_v5, %v1810_v63  ;;  %v135_v11 = vsel %vm131_vm5, %v129_v4, %v1811_v62  ;;  %v32_v62 = vld [vmem:[#allocation2] sm:$0x3]  ;;  %v202_v63 = vld [vmem:[#allocation2 + $0x8] sm:$0x3]  ;;  %v2182_v4 = vsel %vm223_vm0, %v1855_v1, 0 }
 0x10a   :  { %v1814_v3 = vpop.permute.xlu0 %1813 }
 0x10b   :  { %v1816_v6 = vunpack.i.h.bf16 %v1814_v3  ;;  %v1815_v8 = vunpack.i.l.bf16 %v1814_v3  ;;  %v2178_v3 = vld [vmem:[%s2418_s2] sm:$0xf] }
 0x10c   :  { %v89_v12 = vpop.permute.xlu1 %88  ;;  %v515_v5 = vpack.c.bf16 %v2178_v3, %v2178_v3 }
 0x10d   :  { %v140_v13 = vsel %vm137_vm6, %v134_v10, %v1815_v8  ;;  %v141_v14 = vsel %vm137_vm6, %v135_v11, %v1816_v6  ;;  %v130_v41 = vsel %vm125_vm4, %v1785_v42, %v89_v12 }
 0x10e   :  { %v1834_v15 = vpop.permute.xlu0 %1833  ;;  %v144_v16 = vpack.c.bf16 %v141_v14, %v140_v13 }
 0x10f   :  { %v1836_v23 = vunpack.i.h.bf16 %v1834_v15  ;;  %v1835_v2 = vunpack.i.l.bf16 %v1834_v15  ;;  %v1856_v15 = vld [vmem:[#allocation2 + $0x10] sm:$0x7f]  }
 0x110   :  { %v104_v17 = vpop.permute.xlu1 %103  ;;  %1557 = vmatpush3.bf16.msra.mxu0 %v144_v16  ;;  %v469_v21 = vsel %vm358_vm10, %v1856_v15, 0 }
 0x111   :  { %1558 = vmatprep.subr.bf16.mxu0 %v1952_v37  ;;  %v333_v38 = vsel %vm330_vm7, %v224_v30, %v1835_v2  ;;  %v334_v39 = vsel %vm330_vm7, %v1786_v7, %v1836_v23  ;;  %v136_v55 = vsel %vm131_vm5, %v130_v41, %v104_v17  ;;  %v409_v23 = vld [vmem:[#allocation2 + $0x28] sm:$0x1]  ;;  %v455_v2 = vlaneseq }
 0x112   :  { %v1839_v18 = vpop.permute.xlu0 %1838 }
 0x113   :  { %v1841_v26 = vunpack.i.h.bf16 %v1839_v18  ;;  %v1840_v27 = vunpack.i.l.bf16 %v1839_v18 }
 0x114   :  { %v1819_v19 = vpop.permute.xlu1 %1818 }
 0x115   :  { %v1821_v31 = vunpack.i.h.bf16 %v1819_v19  ;;  %v1820_v32 = vunpack.i.l.bf16 %v1819_v19  ;;  %v338_v43 = vsel %vm335_vm8, %v333_v38, %v1840_v27  ;;  %v339_v44 = vsel %vm335_vm8, %v334_v39, %v1841_v26 }
 0x116   :  { %v1844_v25 = vpop.permute.xlu0 %1843  ;;  %v579_v26 = vunpack.c.l.bf16 %v409_v23 }
 0x117   :  { %v1846_v33 = vunpack.i.h.bf16 %v1844_v25  ;;  %v1845_v34 = vunpack.i.l.bf16 %v1844_v25  ;;  %v331_v46 = vsel %vm330_vm7, %v221_v9, %v1820_v32  ;;  %v332_v47 = vsel %vm330_vm7, %v222_v40, %v1821_v31 }
 0x118   :  { %v1824_v28 = vpop.permute.xlu1 %1823  ;;  %v456_v25 = vshrl.u32 %v455_v2, 7 }
 0x119   :  { %v1826_v35 = vunpack.i.h.bf16 %v1824_v28  ;;  %v1825_v36 = vunpack.i.l.bf16 %v1824_v28  ;;  %v343_v51 = vsel %vm340_vm9, %v338_v43, %v1845_v34  ;;  %v344_v52 = vsel %vm340_vm9, %v339_v44, %v1846_v33 }
 0x11a   :  { %v346_v59 = vpack.c.bf16 %v344_v52, %v343_v51  ;;  %v2194_v27 = vsub.s32 0, %v456_v25  ;;  %v408_v51 = vld [vmem:[#allocation2 + $0x24] sm:$0x1] }
 0x11b   :  { %v336_v49 = vsel %vm335_vm8, %v331_v46, %v1825_v36  ;;  %v337_v50 = vsel %vm335_vm8, %v332_v47, %v1826_v35  ;;  %v454_v52 = vunpack.c.l.bf16 %v408_v51 }
 0x11c   :  { %v1829_v45 = vpop.permute.xlu1 %1828  ;;  %v360_v29 = vsel %vm358_vm10, %v346_v59, 0  ;;  %v583_v28 = vrot.slane %v579_v26, %v2194_v27 }
 0x11d   :  { %v1831_v48 = vunpack.i.h.bf16 %v1829_v45  ;;  %v1830_v24 = vunpack.i.l.bf16 %v1829_v45  ;;  %v458_v41 = vrot.slane %v454_v52, %v2194_v27 }
 0x11f   :  { %v341_v53 = vsel %vm340_vm9, %v336_v49, %v1830_v24  ;;  %v342_v54 = vsel %vm340_vm9, %v337_v50, %v1831_v48 }
 0x120   :  { %v119_v56 = vpop.permute.xlu1 %118  ;;  %v345_v57 = vpack.c.bf16 %v342_v54, %v341_v53 }
 0x121   :  { %v142_v58 = vsel %vm137_vm6, %v136_v55, %v119_v56 }
 0x122   :  { %v145_v60 = vpack.c.bf16 %v142_v58, %v142_v58  ;;  %1565 = vmatpush3.bf16.msra.mxu1 %v345_v57 }
 0x123   :  { %1566 = vmatprep.subr.bf16.mxu1 %v1952_v37 }
 0x124   :  { %v159_v61 = vsel %vm157_vm2, %v145_v60, 0 }
 0x125   :  { %1559 = vmatpush3.bf16.msra.mxu0 %v159_v61 }
 0x126   :  { %1567 = vmatpush3.bf16.msra.mxu1 %v360_v29  ;;  %1578 = vmatprep.subr.bf16.mxu0 %v1952_v37 }
 0x127   :  { %1572 = vmatprep.subr.bf16.mxu1 %v1952_v37 }
 0x128   :  { %1561 = vmatmul.mubr.msk.bf16.vlgmr.msra.gmra.mrb[0].mxu0 %vm153_vm11, %v32_v62 }
 0x129   :  { %1569 = vmatmul.mubr.msk.bf16.vlgmr.msra.gmra.mrb[0].mxu1 %vm354_vm12, %v202_v63  ;;  %1582 = vmatprep.mubr.msk.bf16.mxu0 %vm1959_vm3, %v1952_v37 }
 0x12a   :  { %1574 = vmatprep.mubr.msk.bf16.mxu1 %vm1959_vm3, %v1952_v37  ;;  %1579 = vmatpush3.bf16.msra.mxu0 %v2172_v0 }
 0x12b   :  { %1580 = vmatprep.subr.bf16.mxu0 %v1952_v37  ;;  %1573 = vmatpush3.bf16.msra.mxu1 %v469_v21 }
 0x12c   :  { %1586 = vmatprep.subr.bf16.mxu1 %v1952_v37 }
 0x12e   :  { %1581 = vmatpush3.bf16.msra.mxu0 %v2182_v4 }
 0x12f   :  { %1594 = vmatprep.subr.bf16.mxu0 %v1952_v37 }
 0x131   :  { %1583 = vmatmul.mubr.msk.bf16.vlgmr.msra.gmra.mrb[4].mxu0 %vm525_vm13, %v515_v5  ;;  %v1850_v6 = vpop.permute.xlu1 %1849 }
 0x132   :  { %1598 = vmatprep.mubr.msk.bf16.mxu0 %vm1959_vm3, %v1952_v37 }
 0x1fb   :  { %v195_v8 = vpop.f32.mrb[0].mxu0 }
 0x1fc   :  { %v396_v10 = vpop.f32.mrb[0].mxu1  ;;  %v1562_v11 = vpop.f32.mrb[1].mxu0  ;;  %v1920_v18 = vadd.low.f32.bf16 %v195_v8, %v1850_v6  ;;  %v2221_v8 = vld [vmem:[#allocation2 + $0x38] sm:$0xff]  }
 0x1fd   :  { %v1919_v12 = vadd.high.f32.bf16 %v396_v10, %v1850_v6  ;;  %v1570_v13 = vpop.f32.mrb[1].mxu1  ;;  %v198_v14 = vpop.f32.mrb[2].mxu0  ;;  %v1858_v10 = vld [vmem:[#allocation2 + $0x40] ss:$0 sps:$4 sm:$0x33]   ;;  %v2223_v11 = vld [vmem:[#allocation2 + $0x2c] sm:$0xff]   ;;  %1595 = vmatpush3.bf16.msra.mxu0 %v2221_v8 }
 0x1fe   :  { %v399_v16 = vpop.f32.mrb[2].mxu1  ;;  %v1563_v17 = vpop.f32.mrb[3].mxu0  ;;  %v201_v22 = vmax.f32 %v1920_v18, 0.0  ;;  %v2229_v13 = vld [vmem:[%s2418_s2 + $0x4] sm:$0xf]  ;;  %1596 = vmatprep.subr.bf16.mxu0 %v1952_v37  ;;  %s1969_s2 = smov 108  }
 0x1ff   :  { %v402_v19 = vmax.f32 %v1919_v12, 0.0  ;;  %v1571_v20 = vpop.f32.mrb[3].mxu1  ;;  %v1860_v12 = vld [vmem:[#allocation2 + $0x34] ss:$0 sps:$4 sm:$0x33]   ;;  %v676_v15 = vpack.c.bf16 %v2229_v13, %v2229_v13 }
 0x200   :  { %v2238_v14 = vsel %vm223_vm0, %v1860_v12, 0 }
 0x201   :  { %419 = vrot.lane.b32.xlu0 %v402_v19, %s1953_s0  ;;  %427 = vrot.lane.b32.xlu1 %v402_v19, %s1961_s28 }
 0x204   :  { %v566_v30 = vpop.f32.mrb[4].mxu0 }
 0x205   :  { %441 = vrot.lane.b32.xlu1 %v402_v19, %s1962_s29  ;;  %424 = vrot.lane.b32.xlu0 %v201_v22, %s1963_s30  ;;  %v1584_v7 = vpop.f32.mrb[5].mxu0 }
 0x206   :  { %v569_v31 = vpop.f32.mrb[6].mxu0 }
 0x207   :  { %v1585_v32 = vpop.f32.mrb[7].mxu0 }
 0x209   :  { %431 = vrot.lane.b32.xlu1 %v201_v22, %s1964_s5  ;;  %438 = vrot.lane.b32.xlu0 %v201_v22, %s1965_s6 }
 0x20d   :  { %434 = vrot.lane.b32.xlu0 %v402_v19, %s1951_s19  ;;  %585 = vrot.lane.b32.xlu1 %v583_v28, %s1966_s7  ;;  %v417_v19 = vld [vmem:[#allocation2 + $0x48] sm:$0x1] }
 0x20e   :  { %v739_v21 = vunpack.c.l.bf16 %v417_v19 }
 0x210   :  { %v743_v2 = vrot.slane %v739_v21, %v2194_v27 }
 0x273   :  { %v420_v33 = vpop.permute.xlu0 %419  ;;  %v428_v34 = vpop.permute.xlu1 %427 }
 0x274   :  { %v422_v46 = vsel %vm125_vm4, %v201_v22, %v420_v33 }
 0x277   :  { %v442_v35 = vpop.permute.xlu1 %441  ;;  %v425_v36 = vpop.permute.xlu0 %424 }
 0x278   :  { %v430_v9 = vsel %vm125_vm4, %v425_v36, %v428_v34 }
 0x279   :  { %v446_v42 = vrot.slane %v430_v9, 4 }
 0x27b   :  { %v432_v38 = vpop.permute.xlu1 %431  ;;  %v439_v39 = vpop.permute.xlu0 %438  ;;  %v451_v24 = vsel %vm157_vm2, %v422_v46, %v446_v42 }
 0x27c   :  { %v444_v40 = vsel %vm125_vm4, %v439_v39, %v442_v35  ;;  %v416_v35 = vld [vmem:[#allocation2 + $0x44] sm:$0x1] }
 0x27d   :  { %v449_v43 = vrot.slane %v444_v40, 4  ;;  %v613_v36 = vunpack.c.l.bf16 %v416_v35 }
 0x27f   :  { %v435_v44 = vpop.permute.xlu0 %434  ;;  %v2201_v45 = vpop.permute.xlu1 %585  ;;  %v2280_v9 = vrot.slane %v613_v36, %v2194_v27 }
 0x280   :  { %v437_v47 = vsel %vm125_vm4, %v432_v38, %v435_v44  ;;  %v588_v48 = vadd.f32 %v2201_v45, %v566_v30 }
 0x281   :  { %v452_v49 = vsel %vm157_vm2, %v437_v47, %v449_v43 }
 0x282   :  { %v453_v50 = vpack.c.bf16 %v452_v49, %v451_v24  ;;  %590 = vrot.lane.b32.xlu0 %v588_v48, %s1967_s8 }
 0x284   :  { %1575 = vmatmul.mubr.msk.bf16.vlgmr.msra.gmra.mrb[4].mxu1 %vm464_vm14, %v453_v50 }
 0x285   :  { %1590 = vmatprep.mubr.msk.bf16.mxu1 %vm1959_vm3, %v1952_v37  ;;  %1587 = vmatpush3.bf16.msra.mxu1 %v2223_v11 }
 0x286   :  { %1588 = vmatprep.subr.bf16.mxu1 %v1952_v37 }
 0x289   :  { %1589 = vmatpush3.bf16.msra.mxu1 %v2238_v14 }
 0x28a   :  { %1602 = vmatprep.subr.bf16.mxu1 %v1952_v37 }
 0x2f4   :  { %v591_v62 = vpop.permute.xlu0 %590 }
 0x357   :  { %v505_v53 = vpop.f32.mrb[4].mxu1 }
 0x358   :  { %v2212_v54 = vadd.f32 %v505_v53, %v458_v41  ;;  %v1576_v55 = vpop.f32.mrb[5].mxu1 }
 0x359   :  { %v508_v56 = vpop.f32.mrb[6].mxu1 }
 0x35a   :  { %v572_v57 = vadd.f32 %v566_v30, %v2212_v54  ;;  %v2215_v58 = vadd.f32 %v508_v56, %v458_v41  ;;  %v1577_v59 = vpop.f32.mrb[7].mxu1 }
 0x35c   :  { %v1478_v60 = vmul.f32 -1.442695, %v572_v57 }
 0x35e   :  { %1863 = vpow2.f32 %v1478_v60 }
 0x368   :  { %v1864_v61 = vpop.eup %1863 }
 0x369   :  { %v576_v29 = vadd.f32 1.0, %v1864_v61 }
 0x36b   :  { %1865 = vrcp.f32 %v576_v29 }
 0x375   :  { %v1866_v63 = vpop.eup %1865 }
 0x376   :  { %v593_v1 = vmul.f32 %v1866_v63, %v591_v62  ;;  %v600_v18 = vsub.f32 1.0, %v1866_v63 }
 0x378   :  { %595 = vrot.lane.b32.xlu1 %v593_v1, %s1966_s7 }
 0x37c   :  { %607 = vrot.lane.b32.xlu1 %v2178_v3, %s1968_s3  ;;  %v2233_v3 = vsel %vm223_vm0, %v1858_v10, 0 }
 0x37d   :  { %1597 = vmatpush3.bf16.msra.mxu0 %v2233_v3 }
 0x37e   :  { %1610 = vmatprep.subr.bf16.mxu0 %v1952_v37 }
 0x380   :  { %1599 = vmatmul.mubr.msk.bf16.vlgmr.msra.gmra.mrb[8].mxu0 %vm525_vm13, %v676_v15  ;;  %745 = vrot.lane.b32.xlu1 %v743_v2, %s1966_s7 }
 0x381   :  { %1611 = vmatpush3.bf16.msra.mxu0 %v2223_v11  ;;  %1614 = vmatprep.mubr.msk.bf16.mxu0 %vm1959_vm3, %v1952_v37 }
 0x382   :  { %1612 = vmatprep.subr.bf16.mxu0 %v1952_v37 }
 0x385   :  { %1613 = vmatpush3.bf16.msra.mxu0 %v2238_v14 }
 0x386   :  { %1626 = vmatprep.subr.bf16.mxu0 %v1952_v37 }
 0x3ea   :  { %v596_v5 = vpop.permute.xlu1 %595 }
 0x3eb   :  { %v598_v6 = vadd.f32 %v596_v5, %v2212_v54 }
 0x3ed   :  { %1867 = vtanh.f32 %v598_v6 }
 0x3ee   :  { %v608_v17 = vpop.permute.xlu1 %607 }
 0x3ef   :  { %v610_v22 = vmul.f32 %v1866_v63, %v608_v17 }
 0x3f2   :  { %v2261_v32 = vpop.permute.xlu1 %745 }
 0x3f7   :  { %v1868_v16 = vpop.eup %1867 }
 0x3f8   :  { %602 = vrot.lane.b32.xlu0 %v1868_v16, %s1969_s2 }
 0x453   :  { %v726_v28 = vpop.f32.mrb[8].mxu0 }
 0x454   :  { %v1600_v30 = vpop.f32.mrb[9].mxu0  ;;  %v748_v33 = vadd.f32 %v2261_v32, %v726_v28 }
 0x455   :  { %v729_v7 = vpop.f32.mrb[10].mxu0 }
 0x456   :  { %v1601_v31 = vpop.f32.mrb[11].mxu0 }
 0x46a   :  { %v603_v20 = vpop.permute.xlu0 %602 }
 0x46b   :  { %v605_v23 = vmul.f32 %v603_v20, %v600_v18 }
 0x46d   :  { %v2255_v25 = vadd.f32 %v610_v22, %v605_v23 }
 0x46f   :  { %v612_v26 = vpack.c.bf16 %v2255_v25, %v2255_v25  ;;  %v842_v23 = vrot.slane %v2255_v25, 4 }
 0x471   :  { %619 = vrot.lane.b32.xlu0 %v612_v26, %s1969_s2 }
 0x475   :  { %750 = vrot.lane.b32.xlu0 %v748_v33, %s1967_s8 }
 0x4e3   :  { %v620_v34 = vpop.permute.xlu0 %619 }
 0x4e4   :  { %1591 = vmatmul.mubr.msk.bf16.vlgmr.msra.gmra.mrb[8].mxu1 %vm525_vm13, %v620_v34 }
 0x4e5   :  { %1603 = vmatpush3.bf16.msra.mxu1 %v2172_v0  ;;  %1606 = vmatprep.mubr.msk.bf16.mxu1 %vm1959_vm3, %v1952_v37 }
 0x4e6   :  { %1604 = vmatprep.subr.bf16.mxu1 %v1952_v37 }
 0x4e7   :  { %v751_v53 = vpop.permute.xlu0 %750 }
 0x4e9   :  { %1605 = vmatpush3.bf16.msra.mxu1 %v2182_v4 }
 0x4ea   :  { %1618 = vmatprep.subr.bf16.mxu1 %v1952_v37 }
 0x4ec   :  { %1607 = vmatmul.mubr.msk.bf16.vlgmr.msra.gmra.mrb[12].mxu1 %vm525_vm13, %v620_v34 }
 0x4ed   :  { %1619 = vmatpush3.bf16.msra.mxu1 %v2221_v8  ;;  %1622 = vmatprep.mubr.msk.bf16.mxu1 %vm1959_vm3, %v1952_v37 }
 0x4ee   :  { %1620 = vmatprep.subr.bf16.mxu1 %v1952_v37 }
 0x4f1   :  { %1621 = vmatpush3.bf16.msra.mxu1 %v2233_v3 }
 0x4f2   :  { %1634 = vmatprep.subr.bf16.mxu1 %v1952_v37 }
 0x5b7   :  { %v670_v38 = vpop.f32.mrb[8].mxu1 }
 0x5b8   :  { %v671_v39 = vadd.f32 %v670_v38, %v2280_v9  ;;  %v1592_v40 = vpop.f32.mrb[9].mxu1 }
 0x5b9   :  { %v673_v42 = vpop.f32.mrb[10].mxu1 }
 0x5ba   :  { %v732_v43 = vadd.f32 %v726_v28, %v671_v39  ;;  %v1593_v44 = vpop.f32.mrb[11].mxu1 }
 0x5bc   :  { %v1485_v46 = vmul.f32 -1.442695, %v732_v43 }
 0x5be   :  { %1869 = vpow2.f32 %v1485_v46 }
 0x5bf   :  { %v806_v47 = vpop.f32.mrb[12].mxu1 }
 0x5c0   :  { %v822_v48 = vadd.f32 %v806_v47, %v2201_v45  ;;  %v1608_v24 = vpop.f32.mrb[13].mxu1  ;;  %v813_v57 = vrot.slane %v806_v47, 4 }
 0x5c1   :  { %v809_v49 = vpop.f32.mrb[14].mxu1 }
 0x5c2   :  { %v824_v50 = vrot.slane %v822_v48, 4  ;;  %v1609_v51 = vpop.f32.mrb[15].mxu1  ;;  %v815_v59 = vadd.f32 %v813_v57, %v2212_v54 }
 0x5c4   :  { %825 = vrot.lane.b32.xlu1 %v824_v50, %s1967_s8  ;;  %v1487_v60 = vmul.f32 -1.442695, %v815_v59 }
 0x5c8   :  { %v1870_v52 = vpop.eup %1869 }
 0x5c9   :  { %v736_v41 = vadd.f32 1.0, %v1870_v52 }
 0x5cb   :  { %1871 = vrcp.f32 %v736_v41 }
 0x5cc   :  { %1873 = vpow2.f32 %v1487_v60 }
 0x5d5   :  { %v1872_v55 = vpop.eup %1871 }
 0x5d6   :  { %v753_v56 = vmul.f32 %v1872_v55, %v751_v53  ;;  %v1874_v61 = vpop.eup %1873  ;;  %v760_v18 = vsub.f32 1.0, %v1872_v55 }
 0x5d7   :  { %v819_v29 = vadd.f32 1.0, %v1874_v61 }
 0x5d8   :  { %755 = vrot.lane.b32.xlu0 %v753_v56, %s1966_s7 }
 0x5d9   :  { %1875 = vrcp.f32 %v819_v29 }
 0x5e3   :  { %v1876_v62 = vpop.eup %1875 }
 0x5e4   :  { %v835_v2 = vsub.f32 1.0, %v1876_v62  ;;  %v844_v26 = vmul.f32 %v1876_v62, %v842_v23 }
 0x636   :  { %v826_v63 = vpop.permute.xlu1 %825 }
 0x637   :  { %v828_v1 = vmul.f32 %v1876_v62, %v826_v63 }
 0x639   :  { %830 = vrot.lane.b32.xlu1 %v828_v1, %s1966_s7 }
 0x63d   :  { %767 = vrot.lane.b32.xlu1 %v2229_v13, %s1968_s3 }
 0x64a   :  { %v756_v5 = vpop.permute.xlu0 %755 }
 0x64b   :  { %v758_v6 = vadd.f32 %v756_v5, %v671_v39 }
 0x64d   :  { %1877 = vtanh.f32 %v758_v6 }
 0x657   :  { %v1878_v10 = vpop.eup %1877 }
 0x658   :  { %762 = vrot.lane.b32.xlu0 %v1878_v10, %s1969_s2 }
 0x6ab   :  { %v831_v12 = vpop.permute.xlu1 %830 }
 0x6ac   :  { %v833_v15 = vadd.f32 %v831_v12, %v2212_v54 }
 0x6ae   :  { %1879 = vtanh.f32 %v833_v15 }
 0x6af   :  { %v768_v17 = vpop.permute.xlu1 %767 }
 0x6b0   :  { %v770_v20 = vmul.f32 %v1872_v55, %v768_v17 }
 0x6b8   :  { %v1880_v16 = vpop.eup %1879 }
 0x6b9   :  { %837 = vrot.lane.b32.xlu0 %v1880_v16, %s1969_s2 }
 0x6ca   :  { %v763_v19 = vpop.permute.xlu0 %762 }
 0x6cb   :  { %v765_v21 = vmul.f32 %v763_v19, %v760_v18 }
 0x6cd   :  { %v2293_v22 = vadd.f32 %v770_v20, %v765_v21 }
 0x6cf   :  { %v894_v13 = vpack.c.bf16 %v2293_v22, %v2293_v22 }
 0x6d1   :  { %896 = vrot.lane.b32.xlu1 %v894_v13, %s1969_s2 }
 0x72b   :  { %v838_v54 = vpop.permute.xlu0 %837 }
 0x72c   :  { %v840_v28 = vmul.f32 %v838_v54, %v835_v2 }
 0x72e   :  { %v2299_v30 = vadd.f32 %v844_v26, %v840_v28 }
 0x730   :  { %v846_v7 = vpack.c.bf16 %v2299_v30, %v2299_v30  ;;  %v1034_v23 = vrot.slane %v2299_v30, 4 }
 0x732   :  { %v848_v31 = vrot.slane %v846_v7, 2 }
 0x734   :  { %849 = vrot.lane.b32.xlu0 %v848_v31, %s1969_s2 }
 0x743   :  { %v897_v33 = vpop.permute.xlu1 %896 }
 0x744   :  { %1623 = vmatmul.mubr.msk.bf16.vlgmr.msra.gmra.mrb[16].mxu1 %vm525_vm13, %v897_v33 }
 0x745   :  { %1635 = vmatpush3.bf16.msra.mxu1 %v2223_v11  ;;  %1638 = vmatprep.mubr.msk.bf16.mxu1 %vm1959_vm3, %v1952_v37 }
 0x746   :  { %1636 = vmatprep.subr.bf16.mxu1 %v1952_v37 }
 0x749   :  { %1637 = vmatpush3.bf16.msra.mxu1 %v2238_v14 }
 0x74a   :  { %1650 = vmatprep.subr.bf16.mxu1 %v1952_v37 }
 0x7a6   :  { %v850_v25 = vpop.permute.xlu0 %849 }
 0x7a7   :  { %1615 = vmatmul.mubr.msk.bf16.vlgmr.msra.gmra.mrb[12].mxu0 %vm525_vm13, %v850_v25 }
 0x7a8   :  { %1627 = vmatpush3.bf16.msra.mxu0 %v2172_v0  ;;  %1630 = vmatprep.mubr.msk.bf16.mxu0 %vm1959_vm3, %v1952_v37 }
 0x7a9   :  { %1628 = vmatprep.subr.bf16.mxu0 %v1952_v37 }
 0x7ac   :  { %1629 = vmatpush3.bf16.msra.mxu0 %v2182_v4 }
 0x7ad   :  { %1642 = vmatprep.subr.bf16.mxu0 %v1952_v37 }
 0x7af   :  { %1631 = vmatmul.mubr.msk.bf16.vlgmr.msra.gmra.mrb[16].mxu0 %vm525_vm13, %v850_v25 }
 0x7b0   :  { %1643 = vmatpush3.bf16.msra.mxu0 %v2221_v8  ;;  %1646 = vmatprep.mubr.msk.bf16.mxu0 %vm1959_vm3, %v1952_v37 }
 0x7b1   :  { %1644 = vmatprep.subr.bf16.mxu0 %v1952_v37 }
 0x7b4   :  { %1645 = vmatpush3.bf16.msra.mxu0 %v2233_v3 }
 0x7b5   :  { %1658 = vmatprep.subr.bf16.mxu0 %v1952_v37 }
 0x817   :  { %v935_v34 = vpop.f32.mrb[16].mxu1 }
 0x818   :  { %v948_v35 = vadd.f32 %v935_v34, %v2261_v32  ;;  %v1624_v36 = vpop.f32.mrb[17].mxu1 }
 0x819   :  { %v938_v38 = vpop.f32.mrb[18].mxu1 }
 0x81a   :  { %950 = vrot.lane.b32.xlu1 %v948_v35, %s1967_s8  ;;  %v1625_v39 = vpop.f32.mrb[19].mxu1 }
 0x87a   :  { %v888_v40 = vpop.f32.mrb[12].mxu0 }
 0x87b   :  { %v889_v42 = vadd.f32 %v888_v40, %v2280_v9  ;;  %v1616_v43 = vpop.f32.mrb[13].mxu0 }
 0x87c   :  { %v891_v44 = vpop.f32.mrb[14].mxu0 }
 0x87d   :  { %v941_v46 = vadd.f32 %v935_v34, %v889_v42  ;;  %v1617_v47 = vpop.f32.mrb[15].mxu0 }
 0x87f   :  { %v1490_v48 = vmul.f32 -1.442695, %v941_v46 }
 0x881   :  { %1881 = vpow2.f32 %v1490_v48 }
 0x882   :  { %v1002_v24 = vpop.f32.mrb[16].mxu0 }
 0x883   :  { %v1015_v49 = vadd.f32 %v1002_v24, %v2201_v45  ;;  %v1632_v50 = vpop.f32.mrb[17].mxu0  ;;  %v1008_v59 = vadd.f32 %v1002_v24, %v2215_v58 }
 0x884   :  { %v1005_v51 = vpop.f32.mrb[18].mxu0 }
 0x885   :  { %1017 = vrot.lane.b32.xlu0 %v1015_v49, %s1967_s8  ;;  %v1633_v52 = vpop.f32.mrb[19].mxu0  ;;  %v1492_v60 = vmul.f32 -1.442695, %v1008_v59 }
 0x88b   :  { %v1882_v41 = vpop.eup %1881 }
 0x88c   :  { %v945_v53 = vadd.f32 1.0, %v1882_v41  ;;  %v951_v56 = vpop.permute.xlu1 %950 }
 0x88e   :  { %1883 = vrcp.f32 %v945_v53 }
 0x88f   :  { %1885 = vpow2.f32 %v1492_v60 }
 0x898   :  { %v1884_v55 = vpop.eup %1883 }
 0x899   :  { %v953_v57 = vmul.f32 %v1884_v55, %v951_v56  ;;  %v1886_v61 = vpop.eup %1885  ;;  %v960_v17 = vsub.f32 1.0, %v1884_v55  ;;  %v966_v19 = vmul.f32 %v1884_v55, %v2293_v22 }
 0x89a   :  { %v1012_v29 = vadd.f32 1.0, %v1886_v61 }
 0x89b   :  { %955 = vrot.lane.b32.xlu1 %v953_v57, %s1966_s7 }
 0x89c   :  { %1887 = vrcp.f32 %v1012_v29 }
 0x8a6   :  { %v1888_v62 = vpop.eup %1887 }
 0x8a7   :  { %v1027_v2 = vsub.f32 1.0, %v1888_v62  ;;  %v1036_v26 = vmul.f32 %v1888_v62, %v1034_v23 }
 0x8f7   :  { %v1018_v63 = vpop.permute.xlu0 %1017 }
 0x8f8   :  { %v1020_v1 = vmul.f32 %v1888_v62, %v1018_v63 }
 0x8fa   :  { %1022 = vrot.lane.b32.xlu0 %v1020_v1, %s1966_s7 }
 0x90d   :  { %v956_v5 = vpop.permute.xlu1 %955 }
 0x90e   :  { %v958_v6 = vadd.f32 %v956_v5, %v889_v42 }
 0x910   :  { %1889 = vtanh.f32 %v958_v6 }
 0x91a   :  { %v1890_v10 = vpop.eup %1889 }
 0x91b   :  { %962 = vrot.lane.b32.xlu1 %v1890_v10, %s1969_s2 }
 0x96c   :  { %v1023_v12 = vpop.permute.xlu0 %1022 }
 0x96d   :  { %v1025_v15 = vadd.f32 %v1023_v12, %v2215_v58 }
 0x96f   :  { %1891 = vtanh.f32 %v1025_v15 }
 0x979   :  { %v1892_v16 = vpop.eup %1891 }
 0x97a   :  { %1029 = vrot.lane.b32.xlu0 %v1892_v16, %s1969_s2 }
 0x98d   :  { %v963_v18 = vpop.permute.xlu1 %962 }
 0x98e   :  { %v965_v20 = vmul.f32 %v963_v18, %v960_v17 }
 0x990   :  { %v2337_v21 = vadd.f32 %v966_v19, %v965_v20 }
 0x992   :  { %v1085_v13 = vpack.c.bf16 %v2337_v21, %v2337_v21 }
 0x994   :  { %1087 = vrot.lane.b32.xlu1 %v1085_v13, %s1969_s2 }
 0x9ec   :  { %v1030_v54 = vpop.permute.xlu0 %1029 }
 0x9ed   :  { %v1032_v28 = vmul.f32 %v1030_v54, %v1027_v2 }
 0x9ef   :  { %v2343_v7 = vadd.f32 %v1036_v26, %v1032_v28 }
 0x9f1   :  { %v1038_v31 = vpack.c.bf16 %v2343_v7, %v2343_v7  ;;  %v1229_v17 = vrot.slane %v2343_v7, 4 }
 0x9f3   :  { %1040 = vrot.lane.b32.xlu0 %v1038_v31, %s1969_s2 }
 0xa06   :  { %v1088_v33 = vpop.permute.xlu1 %1087 }
 0xa07   :  { %1647 = vmatmul.mubr.msk.bf16.vlgmr.msra.gmra.mrb[20].mxu0 %vm525_vm13, %v1088_v33 }
 0xa08   :  { %1659 = vmatpush3.bf16.msra.mxu0 %v2223_v11  ;;  %1662 = vmatprep.mubr.msk.bf16.mxu0 %vm1959_vm3, %v1952_v37 }
 0xa09   :  { %1660 = vmatprep.subr.bf16.mxu0 %v1952_v37 }
 0xa0c   :  { %1661 = vmatpush3.bf16.msra.mxu0 %v2238_v14 }
 0xa0d   :  { %1674 = vmatprep.subr.bf16.mxu0 %v1952_v37 }
 0xa65   :  { %v1041_v30 = vpop.permute.xlu0 %1040 }
 0xa66   :  { %1639 = vmatmul.mubr.msk.bf16.vlgmr.msra.gmra.mrb[20].mxu1 %vm525_vm13, %v1041_v30 }
 0xa67   :  { %1651 = vmatpush3.bf16.msra.mxu1 %v2172_v0  ;;  %1654 = vmatprep.mubr.msk.bf16.mxu1 %vm1959_vm3, %v1952_v37 }
 0xa68   :  { %1652 = vmatprep.subr.bf16.mxu1 %v1952_v37 }
 0xa6b   :  { %1653 = vmatpush3.bf16.msra.mxu1 %v2182_v4 }
 0xa6c   :  { %1666 = vmatprep.subr.bf16.mxu1 %v1952_v37 }
 0xa6e   :  { %1655 = vmatmul.mubr.msk.bf16.vlgmr.msra.gmra.mrb[24].mxu1 %vm525_vm13, %v1041_v30 }
 0xa6f   :  { %1667 = vmatpush3.bf16.msra.mxu1 %v2221_v8  ;;  %1670 = vmatprep.mubr.msk.bf16.mxu1 %vm1959_vm3, %v1952_v37 }
 0xa70   :  { %1668 = vmatprep.subr.bf16.mxu1 %v1952_v37 }
 0xa73   :  { %1669 = vmatpush3.bf16.msra.mxu1 %v2233_v3 }
 0xada   :  { %v1126_v0 = vpop.f32.mrb[20].mxu0 }
 0xadb   :  { %v1139_v11 = vadd.f32 %v1126_v0, %v2261_v32  ;;  %v1648_v14 = vpop.f32.mrb[21].mxu0 }
 0xadc   :  { %v1129_v25 = vpop.f32.mrb[22].mxu0 }
 0xadd   :  { %1141 = vrot.lane.b32.xlu1 %v1139_v11, %s1967_s8  ;;  %v1649_v4 = vpop.f32.mrb[23].mxu0 }
 0xb39   :  { %v1079_v34 = vpop.f32.mrb[20].mxu1 }
 0xb3a   :  { %v1080_v35 = vadd.f32 %v1079_v34, %v2280_v9  ;;  %v1640_v36 = vpop.f32.mrb[21].mxu1 }
 0xb3b   :  { %v1082_v8 = vpop.f32.mrb[22].mxu1 }
 0xb3c   :  { %v1132_v38 = vadd.f32 %v1126_v0, %v1080_v35  ;;  %v1641_v39 = vpop.f32.mrb[23].mxu1 }
 0xb3e   :  { %v1495_v40 = vmul.f32 -1.442695, %v1132_v38 }
 0xb40   :  { %1893 = vpow2.f32 %v1495_v40 }
 0xb41   :  { %v1193_v42 = vpop.f32.mrb[24].mxu1 }
 0xb42   :  { %v1209_v3 = vadd.f32 %v1193_v42, %v2201_v45  ;;  %v1656_v43 = vpop.f32.mrb[25].mxu1  ;;  %v1200_v52 = vrot.slane %v1193_v42, 4 }
 0xb43   :  { %v1196_v44 = vpop.f32.mrb[26].mxu1  ;;  %v1862_v43 = vld [vmem:[#allocation2 + $0x54] ss:$0 sps:$4 sm:$0x33]  }
 0xb44   :  { %v1211_v46 = vrot.slane %v1209_v3, 4  ;;  %v1657_v47 = vpop.f32.mrb[27].mxu1  ;;  %v1202_v41 = vadd.f32 %v1200_v52, %v2215_v58 }
 0xb46   :  { %1212 = vrot.lane.b32.xlu0 %v1211_v46, %s1967_s8  ;;  %v1497_v53 = vmul.f32 -1.442695, %v1202_v41  ;;  %v1389_v46 = vsel %vm223_vm0, %v1862_v43, 0 }
 0xb4a   :  { %v1894_v48 = vpop.eup %1893 }
 0xb4b   :  { %v1136_v24 = vadd.f32 1.0, %v1894_v48 }
 0xb4d   :  { %1895 = vrcp.f32 %v1136_v24 }
 0xb4e   :  { %1897 = vpow2.f32 %v1497_v53 }
 0xb4f   :  { %v1142_v50 = vpop.permute.xlu1 %1141 }
 0xb57   :  { %v1896_v49 = vpop.eup %1895 }
 0xb58   :  { %v1144_v51 = vmul.f32 %v1896_v49, %v1142_v50  ;;  %v1898_v45 = vpop.eup %1897  ;;  %v1151_v5 = vsub.f32 1.0, %v1896_v49  ;;  %v1157_v10 = vmul.f32 %v1896_v49, %v2337_v21  ;;  %v1356_v50 = vrot.slane %v2337_v21, 4 }
 0xb59   :  { %v1206_v55 = vadd.f32 1.0, %v1898_v45 }
 0xb5a   :  { %1146 = vrot.lane.b32.xlu1 %v1144_v51, %s1966_s7  ;;  %v1361_v41 = vsel %vm157_vm2, %v2293_v22, %v1356_v50  ;;  %v1367_v22 = vld [vmem:[#allocation2 + $0x58] sm:$0x1] }
 0xb5b   :  { %1899 = vrcp.f32 %v1206_v55  ;;  %v1368_v21 = vunpack.c.l.bf16 %v1367_v22 }
 0xb65   :  { %v1900_v56 = vpop.eup %1899 }
 0xb66   :  { %v1222_v18 = vsub.f32 1.0, %v1900_v56  ;;  %v1231_v20 = vmul.f32 %v1900_v56, %v1229_v17 }
 0xbb8   :  { %v1213_v57 = vpop.permute.xlu0 %1212 }
 0xbb9   :  { %v1215_v59 = vmul.f32 %v1900_v56, %v1213_v57 }
 0xbbb   :  { %1217 = vrot.lane.b32.xlu0 %v1215_v59, %s1966_s7  ;;  %v1372_v59 = vrot.slane %v1368_v21, %v2194_v27 }
 0xbcc   :  { %v1147_v60 = vpop.permute.xlu1 %1146 }
 0xbcd   :  { %v1149_v61 = vadd.f32 %v1147_v60, %v1080_v35 }
 0xbcf   :  { %1901 = vtanh.f32 %v1149_v61 }
 0xbd9   :  { %v1902_v29 = vpop.eup %1901 }
 0xbda   :  { %1153 = vrot.lane.b32.xlu1 %v1902_v29, %s1969_s2 }
 0xc2d   :  { %v1218_v62 = vpop.permute.xlu0 %1217 }
 0xc2e   :  { %v1220_v63 = vadd.f32 %v1218_v62, %v2215_v58 }
 0xc30   :  { %1903 = vtanh.f32 %v1220_v63 }
 0xc3a   :  { %v1904_v1 = vpop.eup %1903 }
 0xc3b   :  { %1224 = vrot.lane.b32.xlu0 %v1904_v1, %s1969_s2 }
 0xc4c   :  { %v1154_v6 = vpop.permute.xlu1 %1153 }
 0xc4d   :  { %v1156_v12 = vmul.f32 %v1154_v6, %v1151_v5 }
 0xc4f   :  { %v1158_v15 = vadd.f32 %v1157_v10, %v1156_v12 }
 0xc51   :  { %v1281_v16 = vpack.c.bf16 %v1158_v15, %v1158_v15 }
 0xc53   :  { %1283 = vrot.lane.b32.xlu1 %v1281_v16, %s1969_s2 }
 0xcad   :  { %v1225_v19 = vpop.permute.xlu0 %1224 }
 0xcae   :  { %v1227_v13 = vmul.f32 %v1225_v19, %v1222_v18 }
 0xcb0   :  { %v1232_v58 = vadd.f32 %v1231_v20, %v1227_v13 }
 0xcb2   :  { %v1233_v23 = vpack.c.bf16 %v1232_v58, %v1232_v58  ;;  %v1448_v44 = vrot.slane %v1232_v58, 4 }
 0xcb4   :  { %v1235_v2 = vrot.slane %v1233_v23, 2 }
 0xcb6   :  { %1236 = vrot.lane.b32.xlu0 %v1235_v2, %s1969_s2 }
 0xcc5   :  { %v1284_v54 = vpop.permute.xlu1 %1283 }
 0xcc6   :  { %1671 = vmatmul.mubr.msk.bf16.vlgmr.msra.gmra.mrb[28].mxu1 %vm525_vm13, %v1284_v54 }
 0xd28   :  { %v1237_v26 = vpop.permute.xlu0 %1236 }
 0xd29   :  { %1663 = vmatmul.mubr.msk.bf16.vlgmr.msra.gmra.mrb[24].mxu0 %vm525_vm13, %v1237_v26 }
 0xd2a   :  { %1678 = vmatprep.mubr.msk.bf16.mxu0 %vm1959_vm3, %v1952_v37 }
 0xd99   :  { %v1322_v28 = vpop.f32.mrb[28].mxu1 }
 0xd9a   :  { %v1335_v7 = vadd.f32 %v1322_v28, %v2261_v32  ;;  %v1672_v31 = vpop.f32.mrb[29].mxu1 }
 0xd9b   :  { %v1325_v33 = vpop.f32.mrb[30].mxu1 }
 0xd9c   :  { %1337 = vrot.lane.b32.xlu1 %v1335_v7, %s1967_s8  ;;  %v1673_v30 = vpop.f32.mrb[31].mxu1 }
 0xdfc   :  { %v1275_v0 = vpop.f32.mrb[24].mxu0 }
 0xdfd   :  { %v1276_v11 = vadd.f32 %v1275_v0, %v2280_v9  ;;  %v1664_v14 = vpop.f32.mrb[25].mxu0  ;;  %v1861_v9 = vld [vmem:[#allocation2 + $0x4c] sm:$0xff]  }
 0xdfe   :  { %v1278_v25 = vpop.f32.mrb[26].mxu0  ;;  %1675 = vmatpush3.bf16.msra.mxu0 %v1861_v9 }
 0xdff   :  { %v1328_v4 = vadd.f32 %v1322_v28, %v1276_v11  ;;  %v1665_v34 = vpop.f32.mrb[27].mxu0  ;;  %1676 = vmatprep.subr.bf16.mxu0 %v1952_v37 }
 0xe01   :  { %v1500_v35 = vmul.f32 -1.442695, %v1328_v4 }
 0xe02   :  { %1677 = vmatpush3.bf16.msra.mxu0 %v1389_v46 }
 0xe03   :  { %1905 = vpow2.f32 %v1500_v35 }
 0xe0d   :  { %v1906_v36 = vpop.eup %1905 }
 0xe0e   :  { %v1332_v8 = vadd.f32 1.0, %v1906_v36  ;;  %v1338_v39 = vpop.permute.xlu1 %1337 }
 0xe10   :  { %1907 = vrcp.f32 %v1332_v8 }
 0xe1a   :  { %v1908_v38 = vpop.eup %1907 }
 0xe1b   :  { %v1340_v32 = vmul.f32 %v1908_v38, %v1338_v39  ;;  %v1347_v47 = vsub.f32 1.0, %v1908_v38  ;;  %v1353_v24 = vmul.f32 %v1908_v38, %v1158_v15 }
 0xe1d   :  { %1342 = vrot.lane.b32.xlu0 %v1340_v32, %s1966_s7 }
 0xe8f   :  { %v1343_v40 = vpop.permute.xlu0 %1342 }
 0xe90   :  { %v1345_v42 = vadd.f32 %v1343_v40, %v1276_v11 }
 0xe92   :  { %1909 = vtanh.f32 %v1345_v42 }
 0xe9c   :  { %v1910_v3 = vpop.eup %1909 }
 0xe9d   :  { %1349 = vrot.lane.b32.xlu1 %v1910_v3, %s1969_s2 }
 0xea1   :  { %1449 = vrot.lane.b32.xlu1 %v1448_v44, %s1969_s2 }
 0xf0f   :  { %v1350_v48 = vpop.permute.xlu1 %1349 }
 0xf10   :  { %v1352_v49 = vmul.f32 %v1350_v48, %v1347_v47 }
 0xf12   :  { %v1354_v51 = vadd.f32 %v1353_v24, %v1352_v49 }
 0xf13   :  { %v1450_v55 = vpop.permute.xlu1 %1449 }
 0xf14   :  { %v1359_v52 = vrot.slane %v1354_v51, 4 }
 0xf16   :  { %v1362_v53 = vsel %vm157_vm2, %v1158_v15, %v1359_v52 }
 0xf17   :  { %v1363_v45 = vpack.c.bf16 %v1362_v53, %v1361_v41 }
 0xf19   :  { %1374 = vrot.lane.b32.xlu0 %v1363_v45, %s1969_s2 }
 0xf1d   :  { %1452 = vrot.lane.b32.xlu0 %v1359_v52, %s1969_s2 }
 0xf8b   :  { %v1375_v37 = vpop.permute.xlu0 %1374 }
 0xf8c   :  { %1679 = vmatmul.mubr.msk.bf16.vlgmr.msra.gmra.mrb[28].mxu0 %vm525_vm13, %v1375_v37 }
 0xf8f   :  { %v1453_v56 = vpop.permute.xlu0 %1452 }
 0xf90   :  { %v1455_v57 = vsel %vm157_vm2, %v1450_v55, %v1453_v56 }
 0xf91   :  { %1458 = vst.msk [vmem:[%s2420_s4 + $0x10] sm:$0xff] %vm525_vm13, %v1455_v57 }
0x105f   :  { %v1425_v60 = vpop.f32.mrb[28].mxu0 }
0x1060   :  { %v1426_v61 = vadd.f32 %v1425_v60, %v1372_v59  ;;  %v1680_v29 = vpop.f32.mrb[29].mxu0 }
0x1061   :  { %v1428_v62 = vpop.f32.mrb[30].mxu0 }
0x1062   :  { %v1504_v63 = vmul.f32 -1.442695, %v1426_v61  ;;  %v1429_v1 = vadd.f32 %v1428_v62, %v1372_v59  ;;  %v1681_v5 = vpop.f32.mrb[31].mxu0 }
0x1064   :  { %1911 = vpow2.f32 %v1504_v63  ;;  %v1505_v6 = vmul.f32 -1.442695, %v1429_v1 }
0x1066   :  { %1913 = vpow2.f32 %v1505_v6 }
0x106e   :  { %v1912_v10 = vpop.eup %1911 }
0x106f   :  { %v1438_v12 = vadd.f32 1.0, %v1912_v10 }
0x1070   :  { %v1914_v15 = vpop.eup %1913 }
0x1071   :  { %1915 = vrcp.f32 %v1438_v12  ;;  %v1439_v16 = vadd.f32 1.0, %v1914_v15 }
0x1073   :  { %1917 = vrcp.f32 %v1439_v16 }
0x107b   :  { %v1916_v17 = vpop.eup %1915 }
0x107c   :  { %v1445_v18 = vsel %vm1444_vm15, %v1916_v17, 0.0 }
0x107d   :  { %v1918_v27 = vpop.eup %1917  ;;  %1456 = vst.msk [vmem:[%s2420_s4] sm:$0xff] %vm525_vm13, %v1445_v18 }
0x107e   :  { %v1446_v19 = vsel %vm1444_vm15, %v1918_v27, 0.0 }
0x107f   :  { %1457 = vst.msk [vmem:[%s2420_s4 + $0x8] sm:$0xff] %vm525_vm13, %v1446_v19 }
0x1080   :  { %1463 = vsyncpa [#allocation3], 1 }

</bundles_post_ra>
